<compile_context>
chip_gen: v7x
topology: tpu7x:2x2x1
jax: 0.10.0
libtpu: 0.0.40
codegen_flags: <defaults>
</compile_context>

<pallas_src>
import functools
import numpy as np
import jax
import jax.numpy as jnp
from jax.experimental import pallas as pl
from jax.experimental.pallas import tpu as pltpu


def attentiona_kernel(x_ref, wq_ref, wkv_ref, wo_ref, g_ref, b_ref,
                      cos_ref, sin_ref, out_ref, qk_ref,
                      xn_sc, k_sc, v_sc, *, head, head_dim, q_tile, eps):
    D = wq_ref.shape[1]
    half = D // 2
    hd2 = head_dim // 2
    qt = pl.program_id(1)

    # ---- Once per batch element (first q-tile): LayerNorm + K/V precompute.
    # TODO(synk): for very long S this computes the full (S, 2D) KV projection
    # in one shot; chunk it over S if vreg/VMEM pressure becomes an issue.
    @pl.when(qt == 0)
    def _():
        x = x_ref[0]                                           # (S, D) f32
        mu = jnp.mean(x, axis=-1, keepdims=True)
        var = jnp.mean(jnp.square(x - mu), axis=-1, keepdims=True)
        xn = (x - mu) * jax.lax.rsqrt(var + eps) * g_ref[...] + b_ref[...]
        xn_bf = xn.astype(jnp.bfloat16)
        xn_sc[...] = xn_bf                                     # bf16 cache

        # Fused K|V projection: (S, D) @ (D, 2D) -> (S, 2D), f32 accumulation.
        kv = jnp.dot(xn_bf, wkv_ref[...], preferred_element_type=jnp.float32)
        k = kv[:, :D]                                          # "reals-first" layout
        v = kv[:, D:]                                          # natural per-head layout
        # RoPE on K for all heads at once: one full-width roll (XLU) + VPU FMAs.
        k_rot = k * cos_ref[...] + pltpu.roll(k, half, axis=1) * sin_ref[...]
        k_sc[...] = k_rot.astype(k_sc.dtype)
        v_sc[...] = v.astype(v_sc.dtype)

    # ---- Every step: project + rotate the query tile (scale folded in Wq).
    row0 = pl.multiple_of(qt * q_tile, q_tile)
    xn_q = xn_sc[pl.ds(row0, q_tile), :]                       # (TQ, D) bf16
    q = jnp.dot(xn_q, wq_ref[...], preferred_element_type=jnp.float32)
    cos_q = cos_ref[pl.ds(row0, q_tile), :]
    sin_q = sin_ref[pl.ds(row0, q_tile), :]
    q_rot = q * cos_q + pltpu.roll(q, half, axis=1) * sin_q
    q_bf = q_rot.astype(jnp.bfloat16)                          # (TQ, D)

    # ---- Per-head attention; accumulate the output projection per head so no
    # lane-axis concat of heads is needed (Wo row slices are sublane slices).
    out_acc = jnp.zeros((q_tile, D), jnp.float32)
    for h in range(head):                                      # static unrolled loop
        re = slice(h * hd2, (h + 1) * hd2)                     # "real" columns of head h
        im = slice(half + h * hd2, half + (h + 1) * hd2)       # "imag" columns of head h
        s = jax.lax.dot_general(q_bf[:, re], k_sc[:, re],
                                (((1,), (1,)), ((), ())),
                                preferred_element_type=jnp.float32)
        s = s + jax.lax.dot_general(q_bf[:, im], k_sc[:, im],
                                    (((1,), (1,)), ((), ())),
                                    preferred_element_type=jnp.float32)
        # Softmax in f32, EXACT normalization (qk rows must sum to 1).
        s = s - jnp.max(s, axis=-1, keepdims=True)
        e = jnp.exp(s)
        attn = e * (1.0 / jnp.sum(e, axis=-1, keepdims=True))  # (TQ, S)
        qk_ref[0, h, :, :] = attn.astype(qk_ref.dtype)

        cols = slice(h * head_dim, (h + 1) * head_dim)         # natural head columns
        wv = jnp.dot(attn.astype(jnp.bfloat16), v_sc[:, cols],
                     preferred_element_type=jnp.float32)       # (TQ, HD)
        out_acc = out_acc + jnp.dot(wv.astype(jnp.bfloat16), wo_ref[cols, :],
                                    preferred_element_type=jnp.float32)

    out_ref[0, :, :] = out_acc.astype(out_ref.dtype)


def _vmem_limit_bytes():
    # ~7/8 of physical VMEM: 56 MiB on v7x, 112 MiB on v5e/v6e.
    try:
        cap = int(pltpu.get_tpu_info().vmem_capacity_bytes)
    except Exception:
        cap = 64 * 1024 * 1024
    return cap * 7 // 8


def attentiona_forward(x, params, head, *, q_tile=256, qk_dtype=jnp.float32):
    B, S, D = x.shape
    HD = D // head
    TQ = min(S, q_tile)
    assert S % TQ == 0, "sequence length must be divisible by the query tile"
    kern = functools.partial(attentiona_kernel, head=head, head_dim=HD,
                             q_tile=TQ, eps=1e-5)

    in_specs = [
        pl.BlockSpec((1, S, D), lambda b, t: (b, 0, 0)),      # x (fetched once per b)
        pl.BlockSpec((D, D), lambda b, t: (0, 0)),            # Wq  (resident, scale+perm folded)
        pl.BlockSpec((D, 2 * D), lambda b, t: (0, 0)),        # fused K|V weight (resident)
        pl.BlockSpec((D, D), lambda b, t: (0, 0)),            # Wo (resident)
        pl.BlockSpec((1, D), lambda b, t: (0, 0)),            # ln gamma
        pl.BlockSpec((1, D), lambda b, t: (0, 0)),            # ln beta
        pl.BlockSpec((S, D), lambda b, t: (0, 0)),            # RoPE cos table (resident)
        pl.BlockSpec((S, D), lambda b, t: (0, 0)),            # RoPE sin table (signed, resident)
    ]
    out_specs = (
        pl.BlockSpec((1, TQ, D), lambda b, t: (b, t, 0)),           # out q-tile
        pl.BlockSpec((1, head, TQ, S), lambda b, t: (b, 0, t, 0)),  # qk q-tile (all heads)
    )
    out_shape = (
        jax.ShapeDtypeStruct((B, S, D), jnp.float32),
        jax.ShapeDtypeStruct((B, head, S, S), qk_dtype),
    )
    fn = pl.pallas_call(
        kern,
        out_shape=out_shape,
        grid=(B, S // TQ),
        in_specs=in_specs,
        out_specs=out_specs,
        scratch_shapes=[
            pltpu.VMEM((S, D), jnp.bfloat16),   # cached LayerNorm output
            pltpu.VMEM((S, D), jnp.bfloat16),   # cached rotated K
            pltpu.VMEM((S, D), jnp.bfloat16),   # cached V
        ],
        # B is megacore-parallel; the q-tile axis must stay "arbitrary" because
        # the K/V/LN caches are built at q-tile 0 of each batch element.
        compiler_params=pltpu.CompilerParams(
            dimension_semantics=("parallel", "arbitrary"),
            vmem_limit_bytes=_vmem_limit_bytes()),
    )
    return fn(x, params["wq"], params["wkv"], params["wo"],
              params["gamma"], params["beta"], params["cos_g"], params["sin_g"])


def make_params(key, dims, head, seq):
    HD = dims // head
    hd2 = HD // 2
    half = dims // 2
    k1, k2, k3, k4, k5 = jax.random.split(key, 5)
    w_scale = dims ** -0.5
    # PyTorch Linear weight layout is (out, in); we work with the transpose.
    wq = jax.random.normal(k1, (dims, dims), jnp.float32) * w_scale
    wkv = jax.random.normal(k2, (2 * dims, dims), jnp.float32) * w_scale
    wo = jax.random.normal(k3, (dims, dims), jnp.float32) * w_scale
    gamma = 1.0 + 0.1 * jax.random.normal(k4, (dims,), jnp.float32)
    beta = 0.1 * jax.random.normal(k5, (dims,), jnp.float32)

    wq_t = np.asarray(wq).T                       # (in, out)
    wkv_t = np.asarray(wkv).T                     # (in, 2*out)
    wo_t = np.asarray(wo).T
    wk_t = wkv_t[:, :dims]
    wv_t = wkv_t[:, dims:]

    # Global "all reals first | all imags second" column permutation for Q/K:
    #   new col n < D/2   -> head h = n//hd2, pair j = n%hd2 -> orig col h*HD + 2j
    #   new col n >= D/2  -> head h, pair j                  -> orig col h*HD + 2j + 1
    n = np.arange(dims)
    h_idx = np.where(n < half, n // hd2, (n - half) // hd2)
    j_idx = n % hd2
    parity = (n >= half).astype(np.int64)
    new_to_orig = h_idx * HD + 2 * j_idx + parity

    wq_p = wq_t[:, new_to_orig] * (HD ** -0.5)    # score scale folded into Wq
    wk_p = wk_t[:, new_to_orig]
    wkv_f = np.concatenate([wk_p, wv_t], axis=1)  # (D, 2D): [K permuted | V natural]

    # rotary._compute_freqs_base with theta = 10000 (its init value)
    mel_max = 2595.0 * np.log10(1.0 + 4000.0 / 200.0)
    mel_scale = np.power(10.0, np.linspace(0.0, mel_max, hd2) / 2595.0) - 1.0
    freqs = (10000.0 / 220.0) * (200.0 * mel_scale / 1000.0)  # (hd2,)
    pos = np.arange(seq, dtype=np.float64)
    ang = pos[:, None] * freqs[None, :]                       # (S, hd2)
    cos = np.cos(ang).astype(np.float32)
    sin = np.sin(ang).astype(np.float32)
    # Full-width tables matching the "reals-first" layout:
    #   x_rot = x * cos_g + roll(x, D/2) * sin_g
    cos_g = np.tile(cos, (1, 2 * head))                                   # (S, D)
    sin_g = np.concatenate([-np.tile(sin, (1, head)),
                            np.tile(sin, (1, head))], axis=1)             # (S, D)

    return dict(
        # kernel-side (prepared) parameters
        wq=jnp.asarray(wq_p, jnp.bfloat16),
        wkv=jnp.asarray(wkv_f, jnp.bfloat16),
        wo=jnp.asarray(wo_t, jnp.bfloat16),
        gamma=jnp.asarray(gamma).reshape(1, dims),
        beta=jnp.asarray(beta).reshape(1, dims),
        cos_g=jnp.asarray(cos_g), sin_g=jnp.asarray(sin_g),
        # reference-side (f32, original layout) parameters
        wq_t=jnp.asarray(wq_t), wkv_t=jnp.asarray(wkv_t), wo_t=jnp.asarray(wo_t),
        cos=jnp.asarray(cos), sin=jnp.asarray(sin),
    )


def reference_forward(x, params, head):
    """Pure-JAX f32 reference implementing the PyTorch module's math."""
    B, S, D = x.shape
    HD = D // head
    mu = x.mean(-1, keepdims=True)
    var = ((x - mu) ** 2).mean(-1, keepdims=True)
    xn = (x - mu) / jnp.sqrt(var + 1e-5)
    xn = xn * params["gamma"][0] + params["beta"][0]
    q = xn @ params["wq_t"]
    kv = xn @ params["wkv_t"]
    k, v = kv[..., :D], kv[..., D:]

    def split_heads(t):
        return t.reshape(B, S, head, HD).transpose(0, 2, 1, 3)

    qh, kh, vh = map(split_heads, (q, k, v))
    cos = params["cos"]                                        # (S, hd2)
    sin = params["sin"]

    def rope(t):                                               # interleaved rotation
        te, to = t[..., 0::2], t[..., 1::2]
        re = te * cos - to * sin
        ro = te * sin + to * cos
        return jnp.stack([re, ro], axis=-1).reshape(t.shape)

    qh, kh = rope(qh), rope(kh)
    scores = jnp.einsum("bhid,bhjd->bhij", qh, kh) * (HD ** -0.5)
    attn = jax.nn.softmax(scores, axis=-1)
    wv = jnp.einsum("bhij,bhjd->bhid", attn, vh)
    out = wv.transpose(0, 2, 1, 3).reshape(B, S, D) @ params["wo_t"]
    return out, attn


if __name__ == "__main__":
    B, S, D, H = 2, 8, 128, 4
    key = jax.random.PRNGKey(0)
    kx, kp = jax.random.split(key)
    x = jax.random.normal(kx, (B, S, D), jnp.float32)
    params = make_params(kp, D, H, S)

    out, qk = attentiona_forward(x, params, H)
    jax.block_until_ready((out, qk))

    out_want, qk_want = reference_forward(x, params, H)
    # Tolerances account for bfloat16 matmul operands (f32 accumulation).
    np.testing.assert_allclose(np.asarray(qk), np.asarray(qk_want), rtol=4e-2, atol=4e-2)
    np.testing.assert_allclose(np.asarray(out), np.asarray(out_want), rtol=6e-2, atol=6e-2)

    print("KERNEL_OK")
</pallas_src>

<mosaic_0001>
module attributes {stable_mosaic.version = 11 : i64} {
  func.func @attentiona_kernel(%arg0: i32, %arg1: i32, %arg2: memref<1x8x128xf32, #tpu.memory_space<vmem>>, %arg3: memref<128x128xbf16, #tpu.memory_space<vmem>>, %arg4: memref<128x256xbf16, #tpu.memory_space<vmem>>, %arg5: memref<128x128xbf16, #tpu.memory_space<vmem>>, %arg6: memref<1x128xf32, #tpu.memory_space<vmem>>, %arg7: memref<1x128xf32, #tpu.memory_space<vmem>>, %arg8: memref<8x128xf32, #tpu.memory_space<vmem>>, %arg9: memref<8x128xf32, #tpu.memory_space<vmem>>, %arg10: memref<1x8x128xf32, #tpu.memory_space<vmem>>, %arg11: memref<1x4x8x8xf32, #tpu.memory_space<vmem>>, %arg12: memref<8x128xbf16, #tpu.memory_space<vmem>>, %arg13: memref<8x128xbf16, #tpu.memory_space<vmem>>, %arg14: memref<8x128xbf16, #tpu.memory_space<vmem>>) attributes {dimension_semantics = [#tpu.dimension_semantics<parallel>, #tpu.dimension_semantics<arbitrary>], iteration_bounds = array<i64: 2, 1>, scalar_prefetch = 0 : i64, scratch_operands = 3 : i64, tpu.core_type = #tpu.core_type<tc>, window_params = [{transform_indices = @transform_0, window_bounds = array<i64: 1, 8, 128>}, {pipeline_mode = #tpu.pipeline_mode<synchronous>, transform_indices = @transform_1, window_bounds = array<i64: 128, 128>}, {pipeline_mode = #tpu.pipeline_mode<synchronous>, transform_indices = @transform_2, window_bounds = array<i64: 128, 256>}, {pipeline_mode = #tpu.pipeline_mode<synchronous>, transform_indices = @transform_3, window_bounds = array<i64: 128, 128>}, {pipeline_mode = #tpu.pipeline_mode<synchronous>, transform_indices = @transform_4, window_bounds = array<i64: 1, 128>}, {pipeline_mode = #tpu.pipeline_mode<synchronous>, transform_indices = @transform_5, window_bounds = array<i64: 1, 128>}, {pipeline_mode = #tpu.pipeline_mode<synchronous>, transform_indices = @transform_6, window_bounds = array<i64: 8, 128>}, {pipeline_mode = #tpu.pipeline_mode<synchronous>, transform_indices = @transform_7, window_bounds = array<i64: 8, 128>}, {transform_indices = @transform_8, window_bounds = array<i64: 1, 8, 128>}, {transform_indices = @transform_9, window_bounds = array<i64: 1, 4, 8, 8>}]} {
    %c0_i32 = arith.constant 0 : i32
    %0 = arith.cmpi eq, %arg1, %c0_i32 : i32
    %1 = arith.extui %0 : i1 to i32
    %c0_i32_0 = arith.constant 0 : i32
    %2 = arith.cmpi ne, %1, %c0_i32_0 : i32
    scf.if %2 {
      %c0_75 = arith.constant 0 : index
      %c0_76 = arith.constant 0 : index
      %c0_77 = arith.constant 0 : index
      %134 = vector.load %arg2[%c0_75, %c0_76, %c0_77] : memref<1x8x128xf32, #tpu.memory_space<vmem>>, vector<1x8x128xf32>
      %135 = vector.shape_cast %134 : vector<1x8x128xf32> to vector<8x128xf32>
      %cst_78 = arith.constant dense<0.000000e+00> : vector<8xf32>
      %136 = vector.multi_reduction <add>, %135, %cst_78 [1] : vector<8x128xf32> to vector<8xf32>
      %137 = vector.shape_cast %136 : vector<8xf32> to vector<8x1xf32>
      %cst_79 = arith.constant 1.280000e+02 : f32
      %138 = vector.broadcast %cst_79 : f32 to vector<8x1xf32>
      %139 = arith.divf %137, %138 : vector<8x1xf32>
      %140 = vector.broadcast %139 : vector<8x1xf32> to vector<8x128xf32>
      %141 = arith.subf %135, %140 : vector<8x128xf32>
      %142 = arith.mulf %141, %141 : vector<8x128xf32>
      %cst_80 = arith.constant dense<0.000000e+00> : vector<8xf32>
      %143 = vector.multi_reduction <add>, %142, %cst_80 [1] : vector<8x128xf32> to vector<8xf32>
      %144 = vector.shape_cast %143 : vector<8xf32> to vector<8x1xf32>
      %cst_81 = arith.constant 1.280000e+02 : f32
      %145 = vector.broadcast %cst_81 : f32 to vector<8x1xf32>
      %146 = arith.divf %144, %145 : vector<8x1xf32>
      %147 = vector.broadcast %139 : vector<8x1xf32> to vector<8x128xf32>
      %148 = arith.subf %135, %147 : vector<8x128xf32>
      %cst_82 = arith.constant 9.99999974E-6 : f32
      %149 = vector.broadcast %cst_82 : f32 to vector<8x1xf32>
      %150 = arith.addf %146, %149 : vector<8x1xf32>
      %151 = math.rsqrt %150 : vector<8x1xf32>
      %152 = vector.broadcast %151 : vector<8x1xf32> to vector<8x128xf32>
      %153 = arith.mulf %148, %152 : vector<8x128xf32>
      %c0_83 = arith.constant 0 : index
      %c0_84 = arith.constant 0 : index
      %154 = vector.load %arg6[%c0_83, %c0_84] : memref<1x128xf32, #tpu.memory_space<vmem>>, vector<1x128xf32>
      %155 = vector.broadcast %154 : vector<1x128xf32> to vector<8x128xf32>
      %156 = arith.mulf %153, %155 : vector<8x128xf32>
      %c0_85 = arith.constant 0 : index
      %c0_86 = arith.constant 0 : index
      %157 = vector.load %arg7[%c0_85, %c0_86] : memref<1x128xf32, #tpu.memory_space<vmem>>, vector<1x128xf32>
      %158 = vector.broadcast %157 : vector<1x128xf32> to vector<8x128xf32>
      %159 = arith.addf %156, %158 : vector<8x128xf32>
      %160 = arith.truncf %159 : vector<8x128xf32> to vector<8x128xbf16>
      %c0_87 = arith.constant 0 : index
      %c0_88 = arith.constant 0 : index
      %161 = vector.load %arg12[%c0_87, %c0_88] : memref<8x128xbf16, #tpu.memory_space<vmem>>, vector<8x128xbf16>
      tpu.vector_store %arg12[%c0_87, %c0_88], %160 {strides = array<i32>} : memref<8x128xbf16, #tpu.memory_space<vmem>>, vector<8x128xbf16>,
      %c0_89 = arith.constant 0 : index
      %c0_90 = arith.constant 0 : index
      %162 = vector.load %arg4[%c0_89, %c0_90] : memref<128x256xbf16, #tpu.memory_space<vmem>>, vector<128x256xbf16>
      %cst_91 = arith.constant dense<0.000000e+00> : vector<8x256xf32>
      %163 = tpu.matmul %160, %162, %cst_91 {dimension_numbers = #tpu.dot_dimension_numbers<[1], [0], [0], [1], [0, 0, 1, 1], [], []>} : vector<8x128xbf16>, vector<128x256xbf16>, vector<8x256xf32> -> vector<8x256xf32>
      %164 = vector.extract_strided_slice %163 {offsets = [0, 0], sizes = [8, 128], strides = [1, 1]} : vector<8x256xf32> to vector<8x128xf32>
      %165 = vector.extract_strided_slice %163 {offsets = [0, 128], sizes = [8, 128], strides = [1, 1]} : vector<8x256xf32> to vector<8x128xf32>
      %c0_92 = arith.constant 0 : index
      %c0_93 = arith.constant 0 : index
      %166 = vector.load %arg8[%c0_92, %c0_93] : memref<8x128xf32, #tpu.memory_space<vmem>>, vector<8x128xf32>
      %167 = arith.mulf %164, %166 : vector<8x128xf32>
      %c64_i32_94 = arith.constant 64 : i32
      %168 = tpu.dynamic_rotate %164 by %c64_i32_94 dim 1 : vector<8x128xf32>, i32 -> vector<8x128xf32>
      %c0_95 = arith.constant 0 : index
      %c0_96 = arith.constant 0 : index
      %169 = vector.load %arg9[%c0_95, %c0_96] : memref<8x128xf32, #tpu.memory_space<vmem>>, vector<8x128xf32>
      %170 = arith.mulf %168, %169 : vector<8x128xf32>
      %171 = arith.addf %167, %170 : vector<8x128xf32>
      %172 = arith.truncf %171 : vector<8x128xf32> to vector<8x128xbf16>
      %c0_97 = arith.constant 0 : index
      %c0_98 = arith.constant 0 : index
      %173 = vector.load %arg13[%c0_97, %c0_98] : memref<8x128xbf16, #tpu.memory_space<vmem>>, vector<8x128xbf16>
      tpu.vector_store %arg13[%c0_97, %c0_98], %172 {strides = array<i32>} : memref<8x128xbf16, #tpu.memory_space<vmem>>, vector<8x128xbf16>,
      %174 = arith.truncf %165 : vector<8x128xf32> to vector<8x128xbf16>
      %c0_99 = arith.constant 0 : index
      %c0_100 = arith.constant 0 : index
      %175 = vector.load %arg14[%c0_99, %c0_100] : memref<8x128xbf16, #tpu.memory_space<vmem>>, vector<8x128xbf16>
      tpu.vector_store %arg14[%c0_99, %c0_100], %174 {strides = array<i32>} : memref<8x128xbf16, #tpu.memory_space<vmem>>, vector<8x128xbf16>,
    } else {
    }
    %c8_i32 = arith.constant 8 : i32
    %3 = arith.muli %arg1, %c8_i32 : i32
    %4 = tpu.assume_multiple %3, 8 : i32
    %5 = arith.index_cast %4 : i32 to index
    %c0 = arith.constant 0 : index
    %6 = vector.load %arg12[%5, %c0] : memref<8x128xbf16, #tpu.memory_space<vmem>>, vector<8x128xbf16>
    %c0_1 = arith.constant 0 : index
    %c0_2 = arith.constant 0 : index
    %7 = vector.load %arg3[%c0_1, %c0_2] : memref<128x128xbf16, #tpu.memory_space<vmem>>, vector<128x128xbf16>
    %cst = arith.constant dense<0.000000e+00> : vector<8x128xf32>
    %8 = tpu.matmul %6, %7, %cst {dimension_numbers = #tpu.dot_dimension_numbers<[1], [0], [0], [1], [0, 0, 1, 1], [], []>} : vector<8x128xbf16>, vector<128x128xbf16>, vector<8x128xf32> -> vector<8x128xf32>
    %9 = arith.index_cast %4 : i32 to index
    %c0_3 = arith.constant 0 : index
    %10 = vector.load %arg8[%9, %c0_3] : memref<8x128xf32, #tpu.memory_space<vmem>>, vector<8x128xf32>
    %11 = arith.index_cast %4 : i32 to index
    %c0_4 = arith.constant 0 : index
    %12 = vector.load %arg9[%11, %c0_4] : memref<8x128xf32, #tpu.memory_space<vmem>>, vector<8x128xf32>
    %13 = arith.mulf %8, %10 : vector<8x128xf32>
    %c64_i32 = arith.constant 64 : i32
    %14 = tpu.dynamic_rotate %8 by %c64_i32 dim 1 : vector<8x128xf32>, i32 -> vector<8x128xf32>
    %15 = arith.mulf %14, %12 : vector<8x128xf32>
    %16 = arith.addf %13, %15 : vector<8x128xf32>
    %17 = arith.truncf %16 : vector<8x128xf32> to vector<8x128xbf16>
    %cst_5 = arith.constant 0.000000e+00 : f32
    %18 = vector.broadcast %cst_5 : f32 to vector<8x128xf32>
    %19 = vector.extract_strided_slice %17 {offsets = [0, 0], sizes = [8, 16], strides = [1, 1]} : vector<8x128xbf16> to vector<8x16xbf16>
    %c0_6 = arith.constant 0 : index
    %c0_7 = arith.constant 0 : index
    %20 = vector.load %arg13[%c0_6, %c0_7] : memref<8x128xbf16, #tpu.memory_space<vmem>>, vector<8x16xbf16>
    %cst_8 = arith.constant dense<0.000000e+00> : vector<8x8xf32>
    %21 = tpu.matmul %19, %20, %cst_8 {dimension_numbers = #tpu.dot_dimension_numbers<[1], [1], [0], [0], [0, 0, 1, 0], [], []>} : vector<8x16xbf16>, vector<8x16xbf16>, vector<8x8xf32> -> vector<8x8xf32>
    %22 = vector.extract_strided_slice %17 {offsets = [0, 64], sizes = [8, 16], strides = [1, 1]} : vector<8x128xbf16> to vector<8x16xbf16>
    %c0_9 = arith.constant 0 : index
    %c64 = arith.constant 64 : index
    %23 = vector.load %arg13[%c0_9, %c64] : memref<8x128xbf16, #tpu.memory_space<vmem>>, vector<8x16xbf16>
    %cst_10 = arith.constant dense<0.000000e+00> : vector<8x8xf32>
    %24 = tpu.matmul %22, %23, %cst_10 {dimension_numbers = #tpu.dot_dimension_numbers<[1], [1], [0], [0], [0, 0, 1, 0], [], []>} : vector<8x16xbf16>, vector<8x16xbf16>, vector<8x8xf32> -> vector<8x8xf32>
    %25 = arith.addf %21, %24 : vector<8x8xf32>
    %cst_11 = arith.constant dense<0xFF800000> : vector<8xf32>
    %26 = vector.multi_reduction <maximumf>, %25, %cst_11 [1] : vector<8x8xf32> to vector<8xf32>
    %27 = vector.shape_cast %26 : vector<8xf32> to vector<8x1xf32>
    %28 = vector.broadcast %27 : vector<8x1xf32> to vector<8x8xf32>
    %29 = arith.subf %25, %28 : vector<8x8xf32>
    %30 = math.exp %29 : vector<8x8xf32>
    %cst_12 = arith.constant dense<0.000000e+00> : vector<8xf32>
    %31 = vector.multi_reduction <add>, %30, %cst_12 [1] : vector<8x8xf32> to vector<8xf32>
    %32 = vector.shape_cast %31 : vector<8xf32> to vector<8x1xf32>
    %cst_13 = arith.constant 1.000000e+00 : f32
    %33 = vector.broadcast %cst_13 : f32 to vector<8x1xf32>
    %34 = arith.divf %33, %32 : vector<8x1xf32>
    %35 = vector.broadcast %34 : vector<8x1xf32> to vector<8x8xf32>
    %36 = arith.mulf %30, %35 : vector<8x8xf32>
    %c0_14 = arith.constant 0 : index
    %c0_15 = arith.constant 0 : index
    %c0_16 = arith.constant 0 : index
    %c0_17 = arith.constant 0 : index
    %37 = vector.load %arg11[%c0_14, %c0_15, %c0_16, %c0_17] : memref<1x4x8x8xf32, #tpu.memory_space<vmem>>, vector<1x1x8x8xf32>
    %38 = vector.shape_cast %37 : vector<1x1x8x8xf32> to vector<8x8xf32>
    %39 = vector.shape_cast %36 : vector<8x8xf32> to vector<1x1x8x8xf32>
    tpu.vector_store %arg11[%c0_14, %c0_15, %c0_16, %c0_17], %39 {strides = array<i32>} : memref<1x4x8x8xf32, #tpu.memory_space<vmem>>, vector<1x1x8x8xf32>,
    %40 = arith.truncf %36 : vector<8x8xf32> to vector<8x8xbf16>
    %c0_18 = arith.constant 0 : index
    %c0_19 = arith.constant 0 : index
    %41 = vector.load %arg14[%c0_18, %c0_19] : memref<8x128xbf16, #tpu.memory_space<vmem>>, vector<8x32xbf16>
    %cst_20 = arith.constant dense<0.000000e+00> : vector<8x32xf32>
    %42 = tpu.matmul %40, %41, %cst_20 {dimension_numbers = #tpu.dot_dimension_numbers<[1], [0], [0], [1], [0, 0, 1, 1], [], []>} : vector<8x8xbf16>, vector<8x32xbf16>, vector<8x32xf32> -> vector<8x32xf32>
    %43 = arith.truncf %42 : vector<8x32xf32> to vector<8x32xbf16>
    %c0_21 = arith.constant 0 : index
    %c0_22 = arith.constant 0 : index
    %44 = vector.load %arg5[%c0_21, %c0_22] : memref<128x128xbf16, #tpu.memory_space<vmem>>, vector<32x128xbf16>
    %cst_23 = arith.constant dense<0.000000e+00> : vector<8x128xf32>
    %45 = tpu.matmul %43, %44, %cst_23 {dimension_numbers = #tpu.dot_dimension_numbers<[1], [0], [0], [1], [0, 0, 1, 1], [], []>} : vector<8x32xbf16>, vector<32x128xbf16>, vector<8x128xf32> -> vector<8x128xf32>
    %46 = arith.addf %18, %45 : vector<8x128xf32>
    %47 = vector.extract_strided_slice %17 {offsets = [0, 16], sizes = [8, 16], strides = [1, 1]} : vector<8x128xbf16> to vector<8x16xbf16>
    %c0_24 = arith.constant 0 : index
    %c16 = arith.constant 16 : index
    %48 = vector.load %arg13[%c0_24, %c16] : memref<8x128xbf16, #tpu.memory_space<vmem>>, vector<8x16xbf16>
    %cst_25 = arith.constant dense<0.000000e+00> : vector<8x8xf32>
    %49 = tpu.matmul %47, %48, %cst_25 {dimension_numbers = #tpu.dot_dimension_numbers<[1], [1], [0], [0], [0, 0, 1, 0], [], []>} : vector<8x16xbf16>, vector<8x16xbf16>, vector<8x8xf32> -> vector<8x8xf32>
    %50 = vector.extract_strided_slice %17 {offsets = [0, 80], sizes = [8, 16], strides = [1, 1]} : vector<8x128xbf16> to vector<8x16xbf16>
    %c0_26 = arith.constant 0 : index
    %c80 = arith.constant 80 : index
    %51 = vector.load %arg13[%c0_26, %c80] : memref<8x128xbf16, #tpu.memory_space<vmem>>, vector<8x16xbf16>
    %cst_27 = arith.constant dense<0.000000e+00> : vector<8x8xf32>
    %52 = tpu.matmul %50, %51, %cst_27 {dimension_numbers = #tpu.dot_dimension_numbers<[1], [1], [0], [0], [0, 0, 1, 0], [], []>} : vector<8x16xbf16>, vector<8x16xbf16>, vector<8x8xf32> -> vector<8x8xf32>
    %53 = arith.addf %49, %52 : vector<8x8xf32>
    %cst_28 = arith.constant dense<0xFF800000> : vector<8xf32>
    %54 = vector.multi_reduction <maximumf>, %53, %cst_28 [1] : vector<8x8xf32> to vector<8xf32>
    %55 = vector.shape_cast %54 : vector<8xf32> to vector<8x1xf32>
    %56 = vector.broadcast %55 : vector<8x1xf32> to vector<8x8xf32>
    %57 = arith.subf %53, %56 : vector<8x8xf32>
    %58 = math.exp %57 : vector<8x8xf32>
    %cst_29 = arith.constant dense<0.000000e+00> : vector<8xf32>
    %59 = vector.multi_reduction <add>, %58, %cst_29 [1] : vector<8x8xf32> to vector<8xf32>
    %60 = vector.shape_cast %59 : vector<8xf32> to vector<8x1xf32>
    %cst_30 = arith.constant 1.000000e+00 : f32
    %61 = vector.broadcast %cst_30 : f32 to vector<8x1xf32>
    %62 = arith.divf %61, %60 : vector<8x1xf32>
    %63 = vector.broadcast %62 : vector<8x1xf32> to vector<8x8xf32>
    %64 = arith.mulf %58, %63 : vector<8x8xf32>
    %c0_31 = arith.constant 0 : index
    %c1 = arith.constant 1 : index
    %c0_32 = arith.constant 0 : index
    %c0_33 = arith.constant 0 : index
    %65 = vector.load %arg11[%c0_31, %c1, %c0_32, %c0_33] : memref<1x4x8x8xf32, #tpu.memory_space<vmem>>, vector<1x1x8x8xf32>
    %66 = vector.shape_cast %65 : vector<1x1x8x8xf32> to vector<8x8xf32>
    %67 = vector.shape_cast %64 : vector<8x8xf32> to vector<1x1x8x8xf32>
    tpu.vector_store %arg11[%c0_31, %c1, %c0_32, %c0_33], %67 {strides = array<i32>} : memref<1x4x8x8xf32, #tpu.memory_space<vmem>>, vector<1x1x8x8xf32>,
    %68 = arith.truncf %64 : vector<8x8xf32> to vector<8x8xbf16>
    %c0_34 = arith.constant 0 : index
    %c32 = arith.constant 32 : index
    %69 = vector.load %arg14[%c0_34, %c32] : memref<8x128xbf16, #tpu.memory_space<vmem>>, vector<8x32xbf16>
    %cst_35 = arith.constant dense<0.000000e+00> : vector<8x32xf32>
    %70 = tpu.matmul %68, %69, %cst_35 {dimension_numbers = #tpu.dot_dimension_numbers<[1], [0], [0], [1], [0, 0, 1, 1], [], []>} : vector<8x8xbf16>, vector<8x32xbf16>, vector<8x32xf32> -> vector<8x32xf32>
    %71 = arith.truncf %70 : vector<8x32xf32> to vector<8x32xbf16>
    %c32_36 = arith.constant 32 : index
    %c0_37 = arith.constant 0 : index
    %72 = vector.load %arg5[%c32_36, %c0_37] : memref<128x128xbf16, #tpu.memory_space<vmem>>, vector<32x128xbf16>
    %cst_38 = arith.constant dense<0.000000e+00> : vector<8x128xf32>
    %73 = tpu.matmul %71, %72, %cst_38 {dimension_numbers = #tpu.dot_dimension_numbers<[1], [0], [0], [1], [0, 0, 1, 1], [], []>} : vector<8x32xbf16>, vector<32x128xbf16>, vector<8x128xf32> -> vector<8x128xf32>
    %74 = arith.addf %46, %73 : vector<8x128xf32>
    %75 = vector.extract_strided_slice %17 {offsets = [0, 32], sizes = [8, 16], strides = [1, 1]} : vector<8x128xbf16> to vector<8x16xbf16>
    %c0_39 = arith.constant 0 : index
    %c32_40 = arith.constant 32 : index
    %76 = vector.load %arg13[%c0_39, %c32_40] : memref<8x128xbf16, #tpu.memory_space<vmem>>, vector<8x16xbf16>
    %cst_41 = arith.constant dense<0.000000e+00> : vector<8x8xf32>
    %77 = tpu.matmul %75, %76, %cst_41 {dimension_numbers = #tpu.dot_dimension_numbers<[1], [1], [0], [0], [0, 0, 1, 0], [], []>} : vector<8x16xbf16>, vector<8x16xbf16>, vector<8x8xf32> -> vector<8x8xf32>
    %78 = vector.extract_strided_slice %17 {offsets = [0, 96], sizes = [8, 16], strides = [1, 1]} : vector<8x128xbf16> to vector<8x16xbf16>
    %c0_42 = arith.constant 0 : index
    %c96 = arith.constant 96 : index
    %79 = vector.load %arg13[%c0_42, %c96] : memref<8x128xbf16, #tpu.memory_space<vmem>>, vector<8x16xbf16>
    %cst_43 = arith.constant dense<0.000000e+00> : vector<8x8xf32>
    %80 = tpu.matmul %78, %79, %cst_43 {dimension_numbers = #tpu.dot_dimension_numbers<[1], [1], [0], [0], [0, 0, 1, 0], [], []>} : vector<8x16xbf16>, vector<8x16xbf16>, vector<8x8xf32> -> vector<8x8xf32>
    %81 = arith.addf %77, %80 : vector<8x8xf32>
    %cst_44 = arith.constant dense<0xFF800000> : vector<8xf32>
    %82 = vector.multi_reduction <maximumf>, %81, %cst_44 [1] : vector<8x8xf32> to vector<8xf32>
    %83 = vector.shape_cast %82 : vector<8xf32> to vector<8x1xf32>
    %84 = vector.broadcast %83 : vector<8x1xf32> to vector<8x8xf32>
    %85 = arith.subf %81, %84 : vector<8x8xf32>
    %86 = math.exp %85 : vector<8x8xf32>
    %cst_45 = arith.constant dense<0.000000e+00> : vector<8xf32>
    %87 = vector.multi_reduction <add>, %86, %cst_45 [1] : vector<8x8xf32> to vector<8xf32>
    %88 = vector.shape_cast %87 : vector<8xf32> to vector<8x1xf32>
    %cst_46 = arith.constant 1.000000e+00 : f32
    %89 = vector.broadcast %cst_46 : f32 to vector<8x1xf32>
    %90 = arith.divf %89, %88 : vector<8x1xf32>
    %91 = vector.broadcast %90 : vector<8x1xf32> to vector<8x8xf32>
    %92 = arith.mulf %86, %91 : vector<8x8xf32>
    %c0_47 = arith.constant 0 : index
    %c2 = arith.constant 2 : index
    %c0_48 = arith.constant 0 : index
    %c0_49 = arith.constant 0 : index
    %93 = vector.load %arg11[%c0_47, %c2, %c0_48, %c0_49] : memref<1x4x8x8xf32, #tpu.memory_space<vmem>>, vector<1x1x8x8xf32>
    %94 = vector.shape_cast %93 : vector<1x1x8x8xf32> to vector<8x8xf32>
    %95 = vector.shape_cast %92 : vector<8x8xf32> to vector<1x1x8x8xf32>
    tpu.vector_store %arg11[%c0_47, %c2, %c0_48, %c0_49], %95 {strides = array<i32>} : memref<1x4x8x8xf32, #tpu.memory_space<vmem>>, vector<1x1x8x8xf32>,
    %96 = arith.truncf %92 : vector<8x8xf32> to vector<8x8xbf16>
    %c0_50 = arith.constant 0 : index
    %c64_51 = arith.constant 64 : index
    %97 = vector.load %arg14[%c0_50, %c64_51] : memref<8x128xbf16, #tpu.memory_space<vmem>>, vector<8x32xbf16>
    %cst_52 = arith.constant dense<0.000000e+00> : vector<8x32xf32>
    %98 = tpu.matmul %96, %97, %cst_52 {dimension_numbers = #tpu.dot_dimension_numbers<[1], [0], [0], [1], [0, 0, 1, 1], [], []>} : vector<8x8xbf16>, vector<8x32xbf16>, vector<8x32xf32> -> vector<8x32xf32>
    %99 = arith.truncf %98 : vector<8x32xf32> to vector<8x32xbf16>
    %c64_53 = arith.constant 64 : index
    %c0_54 = arith.constant 0 : index
    %100 = vector.load %arg5[%c64_53, %c0_54] : memref<128x128xbf16, #tpu.memory_space<vmem>>, vector<32x128xbf16>
    %cst_55 = arith.constant dense<0.000000e+00> : vector<8x128xf32>
    %101 = tpu.matmul %99, %100, %cst_55 {dimension_numbers = #tpu.dot_dimension_numbers<[1], [0], [0], [1], [0, 0, 1, 1], [], []>} : vector<8x32xbf16>, vector<32x128xbf16>, vector<8x128xf32> -> vector<8x128xf32>
    %102 = arith.addf %74, %101 : vector<8x128xf32>
    %103 = vector.extract_strided_slice %17 {offsets = [0, 48], sizes = [8, 16], strides = [1, 1]} : vector<8x128xbf16> to vector<8x16xbf16>
    %c0_56 = arith.constant 0 : index
    %c48 = arith.constant 48 : index
    %104 = vector.load %arg13[%c0_56, %c48] : memref<8x128xbf16, #tpu.memory_space<vmem>>, vector<8x16xbf16>
    %cst_57 = arith.constant dense<0.000000e+00> : vector<8x8xf32>
    %105 = tpu.matmul %103, %104, %cst_57 {dimension_numbers = #tpu.dot_dimension_numbers<[1], [1], [0], [0], [0, 0, 1, 0], [], []>} : vector<8x16xbf16>, vector<8x16xbf16>, vector<8x8xf32> -> vector<8x8xf32>
    %106 = vector.extract_strided_slice %17 {offsets = [0, 112], sizes = [8, 16], strides = [1, 1]} : vector<8x128xbf16> to vector<8x16xbf16>
    %c0_58 = arith.constant 0 : index
    %c112 = arith.constant 112 : index
    %107 = vector.load %arg13[%c0_58, %c112] : memref<8x128xbf16, #tpu.memory_space<vmem>>, vector<8x16xbf16>
    %cst_59 = arith.constant dense<0.000000e+00> : vector<8x8xf32>
    %108 = tpu.matmul %106, %107, %cst_59 {dimension_numbers = #tpu.dot_dimension_numbers<[1], [1], [0], [0], [0, 0, 1, 0], [], []>} : vector<8x16xbf16>, vector<8x16xbf16>, vector<8x8xf32> -> vector<8x8xf32>
    %109 = arith.addf %105, %108 : vector<8x8xf32>
    %cst_60 = arith.constant dense<0xFF800000> : vector<8xf32>
    %110 = vector.multi_reduction <maximumf>, %109, %cst_60 [1] : vector<8x8xf32> to vector<8xf32>
    %111 = vector.shape_cast %110 : vector<8xf32> to vector<8x1xf32>
    %112 = vector.broadcast %111 : vector<8x1xf32> to vector<8x8xf32>
    %113 = arith.subf %109, %112 : vector<8x8xf32>
    %114 = math.exp %113 : vector<8x8xf32>
    %cst_61 = arith.constant dense<0.000000e+00> : vector<8xf32>
    %115 = vector.multi_reduction <add>, %114, %cst_61 [1] : vector<8x8xf32> to vector<8xf32>
    %116 = vector.shape_cast %115 : vector<8xf32> to vector<8x1xf32>
    %cst_62 = arith.constant 1.000000e+00 : f32
    %117 = vector.broadcast %cst_62 : f32 to vector<8x1xf32>
    %118 = arith.divf %117, %116 : vector<8x1xf32>
    %119 = vector.broadcast %118 : vector<8x1xf32> to vector<8x8xf32>
    %120 = arith.mulf %114, %119 : vector<8x8xf32>
    %c0_63 = arith.constant 0 : index
    %c3 = arith.constant 3 : index
    %c0_64 = arith.constant 0 : index
    %c0_65 = arith.constant 0 : index
    %121 = vector.load %arg11[%c0_63, %c3, %c0_64, %c0_65] : memref<1x4x8x8xf32, #tpu.memory_space<vmem>>, vector<1x1x8x8xf32>
    %122 = vector.shape_cast %121 : vector<1x1x8x8xf32> to vector<8x8xf32>
    %123 = vector.shape_cast %120 : vector<8x8xf32> to vector<1x1x8x8xf32>
    tpu.vector_store %arg11[%c0_63, %c3, %c0_64, %c0_65], %123 {strides = array<i32>} : memref<1x4x8x8xf32, #tpu.memory_space<vmem>>, vector<1x1x8x8xf32>,
    %124 = arith.truncf %120 : vector<8x8xf32> to vector<8x8xbf16>
    %c0_66 = arith.constant 0 : index
    %c96_67 = arith.constant 96 : index
    %125 = vector.load %arg14[%c0_66, %c96_67] : memref<8x128xbf16, #tpu.memory_space<vmem>>, vector<8x32xbf16>
    %cst_68 = arith.constant dense<0.000000e+00> : vector<8x32xf32>
    %126 = tpu.matmul %124, %125, %cst_68 {dimension_numbers = #tpu.dot_dimension_numbers<[1], [0], [0], [1], [0, 0, 1, 1], [], []>} : vector<8x8xbf16>, vector<8x32xbf16>, vector<8x32xf32> -> vector<8x32xf32>
    %127 = arith.truncf %126 : vector<8x32xf32> to vector<8x32xbf16>
    %c96_69 = arith.constant 96 : index
    %c0_70 = arith.constant 0 : index
    %128 = vector.load %arg5[%c96_69, %c0_70] : memref<128x128xbf16, #tpu.memory_space<vmem>>, vector<32x128xbf16>
    %cst_71 = arith.constant dense<0.000000e+00> : vector<8x128xf32>
    %129 = tpu.matmul %127, %128, %cst_71 {dimension_numbers = #tpu.dot_dimension_numbers<[1], [0], [0], [1], [0, 0, 1, 1], [], []>} : vector<8x32xbf16>, vector<32x128xbf16>, vector<8x128xf32> -> vector<8x128xf32>
    %130 = arith.addf %102, %129 : vector<8x128xf32>
    %c0_72 = arith.constant 0 : index
    %c0_73 = arith.constant 0 : index
    %c0_74 = arith.constant 0 : index
    %131 = vector.load %arg10[%c0_72, %c0_73, %c0_74] : memref<1x8x128xf32, #tpu.memory_space<vmem>>, vector<1x8x128xf32>
    %132 = vector.shape_cast %131 : vector<1x8x128xf32> to vector<8x128xf32>
    %133 = vector.shape_cast %130 : vector<8x128xf32> to vector<1x8x128xf32>
    tpu.vector_store %arg10[%c0_72, %c0_73, %c0_74], %133 {strides = array<i32>} : memref<1x8x128xf32, #tpu.memory_space<vmem>>, vector<1x8x128xf32>,
    return
  }
  func.func @transform_0(%arg0: i32, %arg1: i32) -> (i32, i32, i32) {
    %c0_i32 = arith.constant 0 : i32
    %c0_i32_0 = arith.constant 0 : i32
    %c0_i32_1 = arith.constant 0 : i32
    return %arg0, %c0_i32, %c0_i32_0 : i32, i32, i32
  }
  func.func @transform_1(%arg0: i32, %arg1: i32) -> (i32, i32) {
    %c0_i32 = arith.constant 0 : i32
    %c0_i32_0 = arith.constant 0 : i32
    %c0_i32_1 = arith.constant 0 : i32
    return %c0_i32, %c0_i32_0 : i32, i32
  }
  func.func @transform_2(%arg0: i32, %arg1: i32) -> (i32, i32) {
    %c0_i32 = arith.constant 0 : i32
    %c0_i32_0 = arith.constant 0 : i32
    %c0_i32_1 = arith.constant 0 : i32
    return %c0_i32, %c0_i32_0 : i32, i32
  }
  func.func @transform_3(%arg0: i32, %arg1: i32) -> (i32, i32) {
    %c0_i32 = arith.constant 0 : i32
    %c0_i32_0 = arith.constant 0 : i32
    %c0_i32_1 = arith.constant 0 : i32
    return %c0_i32, %c0_i32_0 : i32, i32
  }
  func.func @transform_4(%arg0: i32, %arg1: i32) -> (i32, i32) {
    %c0_i32 = arith.constant 0 : i32
    %c0_i32_0 = arith.constant 0 : i32
    %c0_i32_1 = arith.constant 0 : i32
    return %c0_i32, %c0_i32_0 : i32, i32
  }
  func.func @transform_5(%arg0: i32, %arg1: i32) -> (i32, i32) {
    %c0_i32 = arith.constant 0 : i32
    %c0_i32_0 = arith.constant 0 : i32
    %c0_i32_1 = arith.constant 0 : i32
    return %c0_i32, %c0_i32_0 : i32, i32
  }
  func.func @transform_6(%arg0: i32, %arg1: i32) -> (i32, i32) {
    %c0_i32 = arith.constant 0 : i32
    %c0_i32_0 = arith.constant 0 : i32
    %c0_i32_1 = arith.constant 0 : i32
    return %c0_i32, %c0_i32_0 : i32, i32
  }
  func.func @transform_7(%arg0: i32, %arg1: i32) -> (i32, i32) {
    %c0_i32 = arith.constant 0 : i32
    %c0_i32_0 = arith.constant 0 : i32
    %c0_i32_1 = arith.constant 0 : i32
    return %c0_i32, %c0_i32_0 : i32, i32
  }
  func.func @transform_8(%arg0: i32, %arg1: i32) -> (i32, i32, i32) {
    %c0_i32 = arith.constant 0 : i32
    %c0_i32_0 = arith.constant 0 : i32
    return %arg0, %arg1, %c0_i32 : i32, i32, i32
  }
  func.func @transform_9(%arg0: i32, %arg1: i32) -> (i32, i32, i32, i32) {
    %c0_i32 = arith.constant 0 : i32
    %c0_i32_0 = arith.constant 0 : i32
    %c0_i32_1 = arith.constant 0 : i32
    return %arg0, %c0_i32, %arg1, %c0_i32_0 : i32, i32, i32, i32
  }
}

</mosaic_0001>

<bundles_post_ra>
// kernel: tpu_custom_call.1
= control target key start
LH: loop header
LB: loop body
LE: loop exit
PB: predicated region body
PF: predicated region fallthrough
CT: control target
= control target key end

     0   :  { %s3062_s0 = inlined_call_operand.hbm [shape: f32[2,8,128], index: 0, kind: input, shape index: {}]   ;;  %s3063_s1 = inlined_call_operand.hbm [shape: bf16[128,128], index: 1, kind: input, shape index: {}]   ;;  %s3064_s2 = inlined_call_operand.hbm [shape: bf16[128,256], index: 2, kind: input, shape index: {}]   ;;  %s3065_s3 = inlined_call_operand.hbm [shape: bf16[128,128], index: 3, kind: input, shape index: {}]   ;;  %s3066_s4 = inlined_call_operand.vmem [shape: f32[1,128], index: 4, kind: input, shape index: {}]   ;;  %s3067_s5 = inlined_call_operand.vmem [shape: f32[1,128], index: 5, kind: input, shape index: {}]   ;;  %s3068_s6 = inlined_call_operand.vmem [shape: f32[8,128], index: 6, kind: input, shape index: {}]   ;;  %s3069_s7 = inlined_call_operand.vmem [shape: f32[8,128], index: 7, kind: input, shape index: {}]   ;;  %s3070_s8 = inlined_call_operand.hbm [shape: f32[2,8,128], index: 8, kind: output, shape index: {0}]   ;;  %s3071_s9 = inlined_call_operand.hbm [shape: f32[2,4,8,8], index: 9, kind: output, shape index: {1}]  }
   0x1   :  { %3083 = sst [smem:[#allocation24_spill]] %s3063_s1 }
   0x2   :  { %3084 = sst [smem:[#allocation25_spill]] %s3070_s8 }
   0x3   :  { %3085 = sst [smem:[#allocation26_spill]] %s3071_s9 }
   0x4   :  { %15 = vsyncpa [#allocation6], 0 }
   0x5   :  { %17 = vsyncpa [#allocation6 + $0x1], 0 }
   0x6   :  { %18 = vsyncpa [#allocation9], 0 }
   0x7   :  { %19 = vsyncpa [#allocation12], 0 }
   0x8   :  { %20 = vsyncpa [#allocation7], 0 }
   0x9   :  { %22 = vsyncpa [#allocation7 + $0x1], 0 }
   0xa   :  { %23 = vsyncpa [#allocation15], 0 }
   0xb   :  { %25 = vsyncpa [#allocation15 + $0x1], 0  ;;  %s2597_s30 = smov 0   ;;  %s2599_s10 = smov 0  }
   0xc   :  { %s2601_s11 = smov 0   ;;  %s2603_s12 = smov 0  }
   0xd   :  { %s2605_s13 = smov 0   ;;  %s2607_s14 = smov 0  }
   0xe LB: > { %3086 = sst [smem:[#allocation21_spill]] %s2503_s30  ;;  %s1830_s15 = sadd.s32 4294967295, %s2523_s14   ;;  %s2523_s14 = sphi %s2607_s14, %s31_s14   ;;  %s2519_s13 = sphi %s2605_s13, %s3117_s13   ;;  %s2515_s12 = sphi %s2603_s12, %s3116_s12   ;;  %s2511_s11 = sphi %s2601_s11, %s3115_s11   ;;  %s2507_s10 = sphi %s2599_s10, %s3114_s10   ;;  %s2503_s30 = sphi %s2597_s30, %s3113_s30  }
   0xf   : > { %3087 = sst [smem:[#allocation22_spill]] %s2515_s12  ;;  %s1831_s16 = sadd.s32 4294967294, %s2523_s14  }
  0x10   : > { %p63_p0 = scmp.ne.s32.totalorder %s2507_s10, %s2503_s30  ;;  %p2631_p1 = scmp.eq.s32.totalorder %s1830_s15, 0 }
  0x11   : > { %p2635_p2 = scmp.eq.s32.totalorder %s1830_s15, 1  ;;  %p242_p3 = scmp.eq.s32.totalorder %s1831_s16, 1 }
  0x12   : > { %s3088_s17 = scalar_select %p2631_p1, 1, 0 }
  0x13   : > { %s3089_s18 = scalar_select %p2635_p2, 1, 0 }
  0x14   : > { %p2641_p4 = por %p2631_p1, %p63_p0  ;;  %p1832_p5 = scmp.ge.s32.totalorder %s2523_s14, 1 }
  0x15   : > { %p2646_p6 = por %p242_p3, %p63_p0  ;;  %p277_p7 = scmp.lt.s32.totalorder %s2523_s14, 3 }
  0x16   : > { %s3090_s19 = scalar_select %p2641_p4, 1, 0 }
  0x17   : > { %s3091_s20 = scalar_select %p2646_p6, 1, 0 }
  0x18   : > { %p2651_p8 = pnand %p1832_p5, %p277_p7  ;;  %s2525_s22 = smov [#allocation8]  }
  0x19   : > { %3092 = sst [smem:[#allocation23_spill]] %s3091_s20  ;;  %s289_s23 = sshll.u32 %s2525_s22, 4  ;;  %s2655_s23 = int_to_ptr.vmem [resolvable:$true] %s289_s23 }
  0x1a   : > { %s3093_s21 = scalar_select %p2651_p8, 1, 0 }
  0x1b   : > { %p2126_p9 = pneg %p2651_p8  ;;  %s2526_s25 = smov [#allocation10]  }
  0x1c   : > { %s302_s26 = sshll.u32 %s2526_s25, 4  ;;  %s3095_s1 = sld [smem:[#allocation24_spill]]  ;;  %s2666_s26 = int_to_ptr.vmem [resolvable:$true] %s302_s26 }
  0x1d   : > { %p2662_p11 = pnand %p2126_p9, %p2631_p1 }
  0x1f   : > { %p2676_p13 = pneg %p2662_p11 }
  0x22   : > { %s2287_s29 = scalar_lea.hbm %s3095_s1, 1024 }
  0x23   : > { %p2288_p12 = scmp.ne.s32.totalorder %s3095_s1, %s2287_s29  ;;  %p2294_p5 = scmp.lt.u32.totalorder %s2287_s29, %s3095_s1 }
  0x25   : > { %p2290_p0 = pnand %p2676_p13, %p2288_p12 }
  0x27   : > { %p2291_p3 = pneg %p2290_p0 }
  0x29   : > { %p2296_p7 = pnand %p2294_p5, %p2291_p3 }
  0x2b   : > { %2299 = shalt.err (!%p2296_p7)
}
  0x2c   : > { %s2300_s27 = scalar_lea.vmem %s2655_s23, 1024  ;;  %p2308_p1 = scmp.lt.s32.totalorder %s2655_s23, %s2655_s23 }
  0x2d   : > { %p2301_p9 = scmp.ne.s32.totalorder %s2655_s23, %s2300_s27  ;;  %p2309_p4 = scmp.lt.s32.totalorder %s2300_s27, %s2300_s27 }
  0x2f   : > { %p2303_p10 = pnand %p2301_p9, %p2676_p13  ;;  %p2310_p12 = por %p2309_p4, %p2308_p1 }
  0x31   : > { %p2304_p6 = pneg %p2303_p10 }
  0x33   : > { %p2311_p0 = pnand %p2310_p12, %p2304_p6 }
  0x35   : > { %2314 = shalt.err (!%p2311_p0)
}
  0x36   : > { %s3080_s28 = smov 64   ;;  %s3081_s20 = smov 4  }
  0x37   : > { %2129 = dma.hbm_to_vmem [thread:$0]  (!%p2662_p11), %s3095_s1, 1024, %s2655_s23, [#allocation9], %s3080_s28, %s3080_s28, %s3081_s20  }
  0x38   : > { %s2315_s27 = scalar_lea.hbm %s3064_s2, 2048 }
  0x39   : > { %p2316_p1 = scmp.ne.s32.totalorder %s3064_s2, %s2315_s27  ;;  %p2322_p10 = scmp.lt.u32.totalorder %s2315_s27, %s3064_s2 }
  0x3b   : > { %p2318_p4 = pnand %p2316_p1, %p2676_p13 }
  0x3d   : > { %p2319_p6 = pneg %p2318_p4 }
  0x3f   : > { %p2324_p3 = pnand %p2322_p10, %p2319_p6 }
  0x41   : > { %2327 = shalt.err (!%p2324_p3)
}
  0x42   : > { %s2328_s23 = scalar_lea.vmem %s2666_s26, 2048  ;;  %p2336_p12 = scmp.lt.s32.totalorder %s2666_s26, %s2666_s26 }
  0x43   : > { %p2329_p5 = scmp.ne.s32.totalorder %s2666_s26, %s2328_s23  ;;  %p2337_p0 = scmp.lt.s32.totalorder %s2328_s23, %s2328_s23 }
  0x45   : > { %p2331_p7 = pnand %p2329_p5, %p2676_p13  ;;  %p2338_p1 = por %p2337_p0, %p2336_p12 }
  0x47   : > { %p2332_p9 = pneg %p2331_p7 }
  0x49   : > { %p2339_p4 = pnand %p2338_p1, %p2332_p9 }
  0x4b   : > { %2342 = shalt.err (!%p2339_p4)
}
  0x4c   : > { %s2529_s8 = smov 128   ;;  %s2530_s9 = smov 8  }
  0x4d   : > { %2132 = dma.hbm_to_vmem [thread:$0]  (!%p2662_p11), %s3064_s2, 2048, %s2666_s26, [#allocation9], %s2529_s8, %s2529_s8, %s2530_s9  }
  0x4e   : > { %s2531_s29 = smov [#allocation11]   ;;  %s2343_s27 = scalar_lea.hbm %s3065_s3, 1024 }
  0x4f   : > { %s315_s15 = sshll.u32 %s2531_s29, 4  ;;  %p2344_p6 = scmp.ne.s32.totalorder %s3065_s3, %s2343_s27  ;;  %s316_s15 = int_to_ptr.vmem [resolvable:$true] %s315_s15 }
  0x50   : > { %p2350_p5 = scmp.lt.u32.totalorder %s2343_s27, %s3065_s3 }
  0x51   : > { %p2346_p10 = pnand %p2344_p6, %p2676_p13 }
  0x53   : > { %p2347_p3 = pneg %p2346_p10 }
  0x55   : > { %p2352_p7 = pnand %p2350_p5, %p2347_p3 }
  0x57   : > { %2355 = shalt.err (!%p2352_p7)
}
  0x58   : > { %s2356_s26 = scalar_lea.vmem %s316_s15, 1024  ;;  %p2364_p1 = scmp.lt.s32.totalorder %s316_s15, %s316_s15 }
  0x59   : > { %p2357_p9 = scmp.ne.s32.totalorder %s316_s15, %s2356_s26  ;;  %p2365_p4 = scmp.lt.s32.totalorder %s2356_s26, %s2356_s26 }
  0x5b   : > { %p2359_p12 = pnand %p2357_p9, %p2676_p13  ;;  %p2366_p8 = por %p2365_p4, %p2364_p1 }
  0x5d   : > { %p2360_p0 = pneg %p2359_p12 }
  0x5f   : > { %p2367_p2 = pnand %p2366_p8, %p2360_p0 }
  0x61   : > { %2370 = shalt.err (!%p2367_p2)
}
  0x62   : > { %s3097_s28 = smov 4   ;;  %s3098_s8 = smov 64  }
  0x63   : > { %2135 = dma.hbm_to_vmem [thread:$0]  (!%p2662_p11), %s3065_s3, 1024, %s316_s15, [#allocation12], %s3098_s8, %s3098_s8, %s3097_s28  }
  0x64   : > { %s43_s22 = sadd.s32 1, %s2519_s13  ;;  %s50_s24 = sadd.s32 1, %s2511_s11 }
  0x65   : > { %p45_p2 = scmp.ge.s32.totalorder %s43_s22, 2  ;;  %p57_p8 = scmp.ne.s32.totalorder %s2511_s11, %s2507_s10 }
  0x66   : > { %p58_p13 = scmp.eq.s32.totalorder %s2523_s14, 0  ;;  %p3100_p10 = scmp.ne.s32.totalorder %s3089_s18, 0 }
  0x67   : > { %s3119_s22 = smov (%p45_p2, %s43_s22), 0  ;;  %p2150_p11 = scmp.lt.s32.totalorder %s2523_s14, 2 }
  0x68   : > { %p2751_p6 = por %p58_p13, %p57_p8  ;;  %p2757_p3 = por %p3100_p10, %p57_p8 }
  0x69   : > { %s47_s12 = ssub.s32 %s2519_s13, %s3119_s22  ;;  %s341_s29 = sand.u32 1, %s2511_s11  }
  0x6a   : > { %p48_p5 = scmp.eq.s32.totalorder %s47_s12, 0  ;;  %s1837_s15 = sshll.u32 %s341_s29, 3 }
  0x6b   : > { %s1838_s25 = sshll.u32 %s2519_s13, 7  ;;  %s345_s18 = scalar_lea.vmem [#allocation5], %s1837_s15 }
  0x6c   : > { %s2766_s16 = scalar_select %p48_p5, %s2511_s11, %s50_s24  }
  0x6d   : > { %s2772_s26 = scalar_lea.hbm %s3062_s0, %s1838_s25  ;;  %s352_s28 = sshll.u32 %s345_s18, 4  ;;  %s2774_s28 = int_to_ptr.vmem [resolvable:$true] %s352_s28 }
  0x6e   : > { %p2778_p7 = pnand %p2150_p11, %p2751_p6  ;;  %s342_s1 = scalar_lea.sflag [#allocation6], %s341_s29 }
  0x6f   : > { %s2371_s20 = scalar_lea.hbm %s2772_s26, 128  ;;  %s2376_s15 = scalar_lea.hbm %s3062_s0, 256 }
  0x70   : > { %p2372_p9 = scmp.ne.s32.totalorder %s2772_s26, %s2371_s20  ;;  %p2373_p12 = pneg %p2778_p7 }
  0x71   : > { %p2377_p4 = scmp.lt.u32.totalorder %s2772_s26, %s3062_s0  ;;  %p2378_p2 = scmp.lt.u32.totalorder %s2376_s15, %s2371_s20 }
  0x72   : > { %p2374_p0 = pnand %p2373_p12, %p2372_p9  ;;  %p2380_p13 = scmp.lt.u32.totalorder %s2371_s20, %s2772_s26 }
  0x73   : > { %p2379_p8 = por %p2378_p2, %p2377_p4 }
  0x74   : > { %p2375_p1 = pneg %p2374_p0 }
  0x75   : > { %p2381_p6 = por %p2380_p13, %p2379_p8 }
  0x77   : > { %p2382_p10 = pnand %p2381_p6, %p2375_p1 }
  0x79   : > { %2385 = shalt.err (!%p2382_p10)
}
  0x7a   : > { %s2386_s29 = scalar_lea.vmem %s2774_s28, 128  ;;  %s2532_s27 = smov [#allocation5]  }
  0x7b   : > { %p2387_p11 = scmp.ne.s32.totalorder %s2774_s28, %s2386_s29  ;;  %s2391_s23 = sshll.u32 %s2532_s27, 4  ;;  %s2392_s23 = int_to_ptr.vmem [resolvable:$false] %s2391_s23 }
  0x7c   : > { %s2393_s18 = scalar_lea.vmem %s2392_s23, 256  ;;  %p2394_p0 = scmp.lt.s32.totalorder %s2774_s28, %s2392_s23 }
  0x7d   : > { %p2389_p5 = pnand %p2387_p11, %p2373_p12  ;;  %p2395_p4 = scmp.lt.s32.totalorder %s2393_s18, %s2386_s29 }
  0x7f   : > { %p2390_p9 = pneg %p2389_p5  ;;  %p2396_p2 = por %p2395_p4, %p2394_p0 }
  0x81   : > { %p2397_p8 = pnand %p2396_p2, %p2390_p9 }
  0x83   : > { %2400 = shalt.err (!%p2397_p8)
}
  0x84   : > { %2139 = dma.hbm_to_vmem [thread:$0]  (!%p2778_p7), %s2772_s26, 128, %s2774_s28, %s342_s1  }
  0x85   : > { %p3103_p1 = scmp.ne.s32.totalorder %s3093_s21, 0 }
  0x86   : > { %s2810_s20 = sand.u32 (!%p3103_p1), 1, %s2507_s10   ;;  %p3104_p12 = scmp.ne.s32.totalorder (!%p3103_p1), %s3090_s19, 0 }
  0x87   : > { %361 = sbr.rel (%p3103_p1) target bundleno = 2976 (0xba0), region = 52  ;;  %s1840_s24 = sshll.u32 (!%p3103_p1), %s2810_s20, 3 }
  0x88   : > { %s364_s12 = scalar_lea.sflag (!%p3103_p1), [#allocation6], %s2810_s20  ;;  %s367_s15 = scalar_lea.vmem (!%p3103_p1), [#allocation5], %s1840_s24 }
  0x8e   : > { %2482 = dma.done.wait (%p3104_p12), %s364_s12, 128  }
  0x8f   : > { %2484 = vsyncadd (%p3104_p12), %s364_s12, 4294967168  ;;  %p3105_p7 = scmp.ne.s32.totalorder %s3088_s17, 0 }
  0x91   : > { %2486 = dma.done.wait (%p3105_p7), [#allocation9], 3072  }
  0x92   : > { %2488 = vsyncadd (%p3105_p7), [#allocation9], 4294964224 }
  0x93   : > { %2490 = dma.done.wait (%p3105_p7), [#allocation12], 1024  }
  0x94   : > { %2492 = vsyncadd (%p3105_p7), [#allocation12], 4294966272  ;;  %v424_v0 = vld [vmem:[%s367_s15] sm:$0xff]  ;;  %v2222_v1 = vld [vmem:[#allocation10 + $0x4] ss:$8 sps:$4 sm:$0xff]   ;;  %v2533_v4 = vmov 0.0  }
  0x95   : > { %425 = vadd.xlane.f32.xlu0 %v424_v0  ;;  %v2224_v2 = vld [vmem:[#allocation10] ss:$8 sps:$4 sm:$0xff]   ;;  %v2225_v3 = vld [vmem:[#allocation10 + $0x14] ss:$8 sps:$4 sm:$0xff]   ;;  %551 = vmatprep.subr.bf16.mxu0 %v2222_v1  ;;  %v2227_v5 = vld [vmem:[#allocation10 + $0x10] ss:$8 sps:$4 sm:$0xff]  }
  0x96   : > { %1959 = vmatprep.subr.bf16.mxu1 %v2533_v4  ;;  %552 = vmatpush1.bf16.msra.mxu0 %v2224_v2  ;;  %v2228_v6 = vld [vmem:[#allocation10 + $0x24] ss:$8 sps:$4 sm:$0xff]   ;;  %v2230_v11 = vld [vmem:[#allocation10 + $0x20] ss:$8 sps:$4 sm:$0xff]   ;;  %v2232_v13 = vld [vmem:[#allocation10 + $0x34] ss:$8 sps:$4 sm:$0xff]  }
  0x97   : > { %553 = vmatprep.subr.bf16.mxu0 %v2225_v3  ;;  %v2231_v12 = vld [vmem:[#allocation8] sm:$0xff]   ;;  %v2234_v14 = vld [vmem:[#allocation10 + $0x30] ss:$8 sps:$4 sm:$0xff]   ;;  %v2235_v15 = vld [vmem:[#allocation8 + $0x8] sm:$0xff]   ;;  %v2534_v20 = vmov 0   ;;  %vm2535_vm0 = vmmov 0  }
  0x98   : > { %1960 = vmatpush3.bf16.msra.mxu1 %v2231_v12  ;;  %v2236_v16 = vld [vmem:[#allocation10 + $0x44] ss:$8 sps:$4 sm:$0xff]   ;;  %v2238_v17 = vld [vmem:[#allocation10 + $0x40] ss:$8 sps:$4 sm:$0xff]   ;;  %v2239_v18 = vld [vmem:[#allocation8 + $0x10] sm:$0xff]   ;;  %583 = vmatprep.mubr.bf16.mxu0 %v2534_v20  ;;  %s2536_s28 = smov 64  }
  0x99   : > { %1961 = vmatprep.subr.bf16.mxu1 %v2533_v4  ;;  %v2240_v19 = vld [vmem:[#allocation10 + $0x54] ss:$8 sps:$4 sm:$0xff]   ;;  %v2242_v21 = vld [vmem:[#allocation10 + $0x50] ss:$8 sps:$4 sm:$0xff]   ;;  %v2244_v23 = vld [vmem:[#allocation10 + $0x64] ss:$8 sps:$4 sm:$0xff]   ;;  %1975 = vmatprep.mubr.msk.bf16.mxu1 %vm2535_vm0, %v2533_v4 }
  0x9a   : > { %554 = vmatpush1.bf16.msra.mxu0 %v2227_v5  ;;  %v2243_v22 = vld [vmem:[#allocation8 + $0x18] sm:$0xff]   ;;  %v2246_v24 = vld [vmem:[#allocation10 + $0x60] ss:$8 sps:$4 sm:$0xff]   ;;  %v2252_v29 = vld [vmem:[#allocation8 + $0x30] sm:$0xff]   ;;  %vm732_vm1 = vcmask 130048   ;;  %vm844_vm2 = vcmask 1043456  }
  0x9b   : > { %555 = vmatprep.subr.bf16.mxu0 %v2228_v6  ;;  %v2247_v25 = vld [vmem:[#allocation8 + $0x20] sm:$0xff]   ;;  %v2248_v26 = vld [vmem:[#allocation10 + $0x74] ss:$8 sps:$4 sm:$0xff]   ;;  %v2250_v27 = vld [vmem:[#allocation10 + $0x70] ss:$8 sps:$4 sm:$0xff]   ;;  %vm825_vm3 = vcmask 64512  }
  0x9c   : > { %1962 = vmatpush3.bf16.msra.mxu1 %v2235_v15  ;;  %v2251_v28 = vld [vmem:[#allocation8 + $0x28] sm:$0xff]   ;;  %v2253_v30 = vld [vmem:[#allocation8 + $0x38] sm:$0xff]   ;;  %v1846_v35 = vld [vmem:[%s3066_s4] ss:$0 sm:$0xff]  ;;  %s2537_s29 = smov 48   ;;  %s2538_s27 = smov 112  }
  0x9d   : > { %1963 = vmatprep.subr.bf16.mxu1 %v2533_v4  ;;  %v1847_v37 = vld [vmem:[%s3067_s5] ss:$0 sm:$0xff]  ;;  %s2539_s23 = smov 32   ;;  %s2540_s18 = smov 96   ;;  %vm1081_vm4 = vcmask 261120  }
  0x9e   : > { %556 = vmatpush1.bf16.msra.mxu0 %v2230_v11  ;;  %v592_v51 = vld [vmem:[%s3068_s6] sm:$0xff]  ;;  %s1845_s12 = sshll.u32 %s2810_s20, 5  ;;  %s2541_s17 = smov 16  }
  0x9f   : > { %557 = vmatprep.subr.bf16.mxu0 %v2232_v13  ;;  %v596_v52 = vld [vmem:[%s3069_s7] sm:$0xff]  ;;  %s2887_s15 = scalar_lea.vmem [#allocation14], %s1845_s12  ;;  %s2542_s19 = smov 80  }
  0xa0   : > { %1964 = vmatpush3.bf16.msra.mxu1 %v2239_v18  ;;  %s3106_s21 = sld [smem:[#allocation22_spill]]  ;;  %s3107_s9 = sld [smem:[#allocation26_spill]] }
  0xa1   : > { %1965 = vmatprep.subr.bf16.mxu1 %v2533_v4 }
  0xa2   : > { %558 = vmatpush1.bf16.msra.mxu0 %v2234_v14 }
  0xa3   : > { %559 = vmatprep.subr.bf16.mxu0 %v2236_v16 }
  0xa4   : > { %1966 = vmatpush3.bf16.msra.mxu1 %v2243_v22 }
  0xa5   : > { %1967 = vmatprep.subr.bf16.mxu1 %v2533_v4 }
  0xa6   : > { %560 = vmatpush1.bf16.msra.mxu0 %v2238_v17  ;;  %s1913_s26 = sshll.u32 %s3106_s21, 9 }
  0xa7   : > { %561 = vmatprep.subr.bf16.mxu0 %v2240_v19  ;;  %s2979_s25 = scalar_lea.hbm %s3107_s9, %s1913_s26 }
  0xa8   : > { %1968 = vmatpush3.bf16.msra.mxu1 %v2247_v25 }
  0xa9   : > { %1969 = vmatprep.subr.bf16.mxu1 %v2533_v4 }
  0xaa   : > { %562 = vmatpush1.bf16.msra.mxu0 %v2242_v21 }
  0xab   : > { %563 = vmatprep.subr.bf16.mxu0 %v2244_v23 }
  0xac   : > { %1970 = vmatpush3.bf16.msra.mxu1 %v2251_v28 }
  0xad   : > { %1971 = vmatprep.subr.bf16.mxu1 %v2533_v4 }
  0xae   : > { %564 = vmatpush1.bf16.msra.mxu0 %v2246_v24 }
  0xaf   : > { %565 = vmatprep.subr.bf16.mxu0 %v2248_v26 }
  0xb0   : > { %1972 = vmatpush3.bf16.msra.mxu1 %v2252_v29 }
  0xb1   : > { %1973 = vmatprep.subr.bf16.mxu1 %v2533_v4 }
  0xb2   : > { %566 = vmatpush1.bf16.msra.mxu0 %v2250_v27 }
  0xb3   : > { %1985 = vmatprep.subr.bf16.mxu0 %v2533_v4 }
  0xb4   : > { %1974 = vmatpush3.bf16.msra.mxu1 %v2253_v30 }
  0xb5   : > { %1979 = vmatprep.subr.bf16.mxu1 %v2533_v4 }
 0x122   : > { %v426_v7 = vpop.xlane.xlu0 %425 }
 0x123   : > { %v428_v8 = vmul.f32 0.0078125, %v426_v7 }
 0x125   : > { %v429_v9 = vsub.f32 %v424_v0, %v428_v8 }
 0x127   : > { %v430_v10 = vmul.f32 %v429_v9, %v429_v9 }
 0x129   : > { %431 = vadd.xlane.f32.xlu0 %v430_v10 }
 0x1b6   : > { %v432_v31 = vpop.xlane.xlu0 %431 }
 0x1b7   : > { %v433_v32 = vmul.f32 0.0078125, %v432_v31 }
 0x1b9   : > { %v434_v33 = vadd.f32 1e-05, %v433_v32 }
 0x1bb   : > { %2269 = vrsqrt.f32 %v434_v33 }
 0x1c5   : > { %v2270_v34 = vpop.eup %2269 }
 0x1c6   : > { %v436_v36 = vmul.f32 %v2270_v34, %v429_v9 }
 0x1c8   : > { %v444_v38 = vmul.f32 %v1846_v35, %v436_v36 }
 0x1ca   : > { %v452_v39 = vadd.f32 %v1847_v37, %v444_v38 }
 0x1cc   : > { %v453_v40 = vpack.c.bf16 %v452_v39, %v452_v39 }
 0x1ce   : > { %454 = vst [vmem:[#allocation2] sm:$0xf] %v453_v40  ;;  %584 = vmatmul.mubr.bf16.vlgmr.msra.gmra.mrb[0].mxu0 %v453_v40 }
 0x1cf   : > { %1987 = vmatprep.mubr.msk.bf16.mxu0 %vm2535_vm0, %v2533_v4 }
 0x1d5   : > { %v608_v41 = vld [vmem:[#allocation2] sm:$0xf] }
 0x1d6   : > { %1976 = vmatmul.mubr.bf16.vlgmr.msra.gmra.mrb[0].mxu1 %v608_v41 }
 0x1d7   : > { %1981 = vmatprep.mubr.msk.bf16.mxu1 %vm2535_vm0, %v2533_v4 }
 0x2a1   : > { %v585_v42 = vpop.f32.mrb[0].mxu0 }
 0x2a2   : > { %594 = vrot.lane.b32.xlu1 %v585_v42, %s2536_s28  ;;  %v587_v43 = vpop.f32.mrb[1].mxu0  ;;  %v593_v54 = vmul.f32 %v592_v51, %v585_v42 }
 0x2a3   : > { %v601_v44 = vpack.c.bf16 %v587_v43, %v587_v43  ;;  %v589_v45 = vpop.f32.mrb[2].mxu0 }
 0x2a4   : > { %v590_v46 = vpop.f32.mrb[3].mxu0 }
 0x2a5   : > { %602 = vst [vmem:[#allocation4] sm:$0xf] %v601_v44 }
 0x2a9   : > { %v707_v47 = vpop.f32.mrb[0].mxu1 }
 0x2aa   : > { %718 = vrot.lane.b32.xlu1 %v707_v47, %s2536_s28  ;;  %v1977_v48 = vpop.f32.mrb[1].mxu1  ;;  %v717_v59 = vmul.f32 %v707_v47, %v592_v51 }
 0x2ab   : > { %v710_v49 = vpop.f32.mrb[2].mxu1 }
 0x2ac   : > { %v1978_v50 = vpop.f32.mrb[3].mxu1  ;;  %v840_v5 = vld [vmem:[#allocation4] sm:$0xf] }
 0x2ad   : > { %v846_v7 = vsel %vm844_vm2, %v840_v5, 0 }
 0x314   : > { %v595_v53 = vpop.permute.xlu1 %594 }
 0x315   : > { %v597_v55 = vmul.f32 %v596_v52, %v595_v53 }
 0x317   : > { %v598_v56 = vadd.f32 %v597_v55, %v593_v54 }
 0x319   : > { %v599_v57 = vpack.c.bf16 %v598_v56, %v598_v56 }
 0x31b   : > { %600 = vst [vmem:[#allocation3] sm:$0xf] %v599_v57 }
 0x31c   : > { %v719_v58 = vpop.permute.xlu1 %718 }
 0x31d   : > { %v720_v60 = vmul.f32 %v719_v58, %v596_v52 }
 0x31f   : > { %v721_v61 = vadd.f32 %v720_v60, %v717_v59 }
 0x321   : > { %v2858_v62 = vpack.c.bf16 %v721_v61, %v721_v61 }
 0x322   : > { %v723_v63 = vld [vmem:[#allocation3] sm:$0xf] }
 0x323   : > { %725 = vrot.lane.b32.xlu1 %v2858_v62, %s2536_s28  ;;  %v783_v0 = vsel %vm732_vm1, %v723_v63, 0  ;;  %v1872_v1 = vcombine.low %v723_v63, %v723_v63  ;;  %v2255_v18 = vld [vmem:[#allocation3] ss:$0 sps:$4 sm:$0xff]  }
 0x324   : > { %1986 = vmatpush3.bf16.xpose.msra.mxu0 %v783_v0  ;;  %v2256_v19 = vld [vmem:[#allocation3] ss:$0 sps:$4 sm:$0xff]  }
 0x325   : > { %730 = vrot.lane.b32.xlu0 %v1872_v1, %s2536_s28  ;;  %2009 = vmatprep.subr.bf16.mxu0 %v2533_v4  ;;  %v2257_v50 = vld [vmem:[#allocation3] ss:$0 sps:$4 sm:$0xff]   ;;  %v2259_v1 = vld [vmem:[#allocation4] ss:$0 sps:$4 sm:$0xff]  }
 0x32b   : > { %1988 = vmatmul.mubr.msk.bf16.vlgmr.msra.gmra.mrb[4].mxu0 %vm732_vm1, %v2858_v62 }
 0x32c   : > { %2011 = vmatprep.mubr.msk.bf16.mxu0 %vm2535_vm0, %v2533_v4 }
 0x395   : > { %v726_v6 = vpop.permute.xlu1 %725 }
 0x397   : > { %v731_v2 = vpop.permute.xlu0 %730 }
 0x398   : > { %v737_v3 = vsel %vm732_vm1, %v731_v2, 0 }
 0x399   : > { %1980 = vmatpush3.bf16.xpose.msra.mxu1 %v737_v3 }
 0x39a   : > { %1991 = vmatprep.subr.bf16.mxu1 %v2533_v4 }
 0x3a0   : > { %1982 = vmatmul.mubr.msk.bf16.vlgmr.msra.gmra.mrb[4].mxu1 %vm732_vm1, %v726_v6 }
 0x3a1   : > { %1992 = vmatpush3.bf16.msra.mxu1 %v846_v7  ;;  %1993 = vmatprep.mubr.msk.bf16.mxu1 %vm2535_vm0, %v2533_v4 }
 0x3a2   : > { %1997 = vmatprep.subr.bf16.mxu1 %v2533_v4 }
 0x3fe   : > { %v819_v8 = vpop.f32.mrb[4].mxu0 }
 0x3ff   : > { %v1989_v9 = vpop.f32.mrb[5].mxu0 }
 0x400   : > { %v822_v10 = vpop.f32.mrb[6].mxu0 }
 0x401   : > { %v1990_v11 = vpop.f32.mrb[7].mxu0 }
 0x473   : > { %v773_v12 = vpop.f32.mrb[4].mxu1 }
 0x474   : > { %v820_v13 = vadd.f32 %v819_v8, %v773_v12  ;;  %v1983_v14 = vpop.f32.mrb[5].mxu1 }
 0x475   : > { %v776_v15 = vpop.f32.mrb[6].mxu1 }
 0x476   : > { %v1984_v16 = vpop.f32.mrb[7].mxu1  ;;  %v826_v17 = vsel %vm825_vm3, %v820_v13, -inf }
 0x477   : > { %827 = vmax.xlane.f32.xlu1 %v826_v17  ;;  %v2260_v17 = vld [vmem:[#allocation11 + $0x10] sm:$0xff]  }
 0x488   : > { %899 = vrot.lane.b32.xlu1 %v2255_v18, %s2537_s29 }
 0x48c   : > { %949 = vrot.lane.b32.xlu1 %v2255_v18, %s2538_s27  ;;  %v2261_v18 = vld [vmem:[#allocation11 + $0x18] sm:$0xff]  }
 0x490   : > { %947 = vrot.lane.b32.xlu1 %v2858_v62, %s2538_s27 }
 0x494   : > { %1186 = vrot.lane.b32.xlu1 %v2256_v19, %s2539_s23 }
 0x498   : > { %1181 = vrot.lane.b32.xlu1 %v2858_v62, %s2539_s23 }
 0x49c   : > { %1236 = vrot.lane.b32.xlu1 %v2256_v19, %s2540_s18 }
 0x504   : > { %v828_v20 = vpop.xlane.xlu1 %827 }
 0x505   : > { %v829_v21 = vsub.f32 %v820_v13, %v828_v20 }
 0x507   : > { %v830_v22 = vmul.f32 1.442695, %v829_v21 }
 0x508   : > { %v900_v27 = vpop.permute.xlu1 %899 }
 0x509   : > { %2271 = vpow2.f32 %v830_v22  ;;  %v905_v30 = vsel %vm732_vm1, %v900_v27, 0 }
 0x50c   : > { %v950_v31 = vpop.permute.xlu1 %949 }
 0x50d   : > { %v955_v34 = vsel %vm732_vm1, %v950_v31, 0 }
 0x510   : > { %v948_v32 = vpop.permute.xlu1 %947 }
 0x513   : > { %v2272_v23 = vpop.eup %2271 }
 0x514   : > { %v832_v24 = vsel %vm825_vm3, %v2272_v23, 0.0  ;;  %v1187_v35 = vpop.permute.xlu1 %1186 }
 0x515   : > { %833 = vadd.xlane.f32.xlu0 %v832_v24  ;;  %v1192_v37 = vsel %vm732_vm1, %v1187_v35, 0 }
 0x518   : > { %v1182_v36 = vpop.permute.xlu1 %1181 }
 0x51c   : > { %v1237_v38 = vpop.permute.xlu1 %1236 }
 0x51d   : > { %v1242_v39 = vsel %vm732_vm1, %v1237_v38, 0  ;;  %v2265_v38 = vld [vmem:[#allocation11 + $0x20] sm:$0xff]  }
 0x52b   : > { %894 = vrot.lane.b32.xlu0 %v2858_v62, %s2537_s29  ;;  %s1651_s29 = scalar_lea.sflag [#allocation15], %s2810_s20 }
 0x52f   : > { %1234 = vrot.lane.b32.xlu0 %v2858_v62, %s2540_s18 }
 0x5a2   : > { %v834_v25 = vpop.xlane.xlu0 %833 }
 0x5a3   : > { %2273 = vrcp.f32 %v834_v25 }
 0x5a6   : > { %v895_v33 = vpop.permute.xlu0 %894 }
 0x5aa   : > { %v1235_v40 = vpop.permute.xlu0 %1234 }
 0x5ad   : > { %v2274_v26 = vpop.eup %2273 }
 0x5ae   : > { %v837_v28 = vmul.f32 %v2274_v26, %v2272_v23  ;;  %v2262_v23 = vld [vmem:[#allocation11] sm:$0xff]  }
 0x5b0   : > { %838 = vst.msk [vmem:[%s2887_s15] sm:$0xff] %vm825_vm3, %v837_v28  ;;  %v839_v29 = vpack.c.bf16 %v837_v28, %v837_v28 }
 0x5b2   : > { %1994 = vmatmul.mubr.msk.bf16.vlgmr.msra.gmra.mrb[8].mxu1 %vm825_vm3, %v839_v29 }
 0x5b3   : > { %1998 = vmatpush3.bf16.xpose.msra.mxu1 %v905_v30  ;;  %1999 = vmatprep.mubr.msk.bf16.mxu1 %vm2535_vm0, %v2533_v4 }
 0x5b4   : > { %2003 = vmatprep.subr.bf16.mxu1 %v2533_v4 }
 0x5ba   : > { %2000 = vmatmul.mubr.msk.bf16.vlgmr.msra.gmra.mrb[12].mxu1 %vm732_vm1, %v895_v33  ;;  %v2263_v33 = vld [vmem:[#allocation11 + $0x8] sm:$0xff]  }
 0x5bb   : > { %2004 = vmatpush3.bf16.xpose.msra.mxu1 %v955_v34  ;;  %2005 = vmatprep.mubr.msk.bf16.mxu1 %vm2535_vm0, %v2533_v4 }
 0x5bc   : > { %2031 = vmatprep.subr.bf16.mxu1 %v2533_v4 }
 0x5c6   : > { %2006 = vmatmul.mubr.msk.bf16.vlgmr.msra.gmra.mrb[12].mxu1 %vm732_vm1, %v948_v32 }
 0x5c7   : > { %2032 = vmatpush3.bf16.xpose.msra.mxu1 %v1192_v37  ;;  %2033 = vmatprep.mubr.msk.bf16.mxu1 %vm2535_vm0, %v2533_v4 }
 0x5c8   : > { %2037 = vmatprep.subr.bf16.mxu1 %v2533_v4 }
 0x5ce   : > { %2034 = vmatmul.mubr.msk.bf16.vlgmr.msra.gmra.mrb[16].mxu1 %vm732_vm1, %v1182_v36 }
 0x5cf   : > { %2038 = vmatpush3.bf16.xpose.msra.mxu1 %v1242_v39  ;;  %2039 = vmatprep.mubr.msk.bf16.mxu1 %vm2535_vm0, %v2533_v4  ;;  %v2266_v39 = vld [vmem:[#allocation11 + $0x28] sm:$0xff]  }
 0x5d0   : > { %2057 = vmatprep.subr.bf16.mxu1 %v2533_v4 }
 0x5da   : > { %2040 = vmatmul.mubr.msk.bf16.vlgmr.msra.gmra.mrb[16].mxu1 %vm732_vm1, %v1235_v40 }
 0x5db   : > { %2059 = vmatprep.mubr.msk.bf16.mxu1 %vm2535_vm0, %v2533_v4 }
 0x685   : > { %v2914_v41 = vpop.f32.mrb[8].mxu1 }
 0x686   : > { %v1995_v42 = vpop.f32.mrb[9].mxu1  ;;  %v888_v35 = vpack.c.bf16 %v2914_v41, %v2914_v41 }
 0x687   : > { %v885_v43 = vpop.f32.mrb[10].mxu1 }
 0x688   : > { %v1996_v44 = vpop.f32.mrb[11].mxu1 }
 0x699   : > { %v991_v45 = vpop.f32.mrb[12].mxu1 }
 0x69a   : > { %v2007_v46 = vpop.f32.mrb[13].mxu1  ;;  %v997_v47 = vsel %vm825_vm3, %v991_v45, -inf }
 0x69b   : > { %998 = vmax.xlane.f32.xlu1 %v997_v47  ;;  %v994_v48 = vpop.f32.mrb[14].mxu1 }
 0x69c   : > { %v2008_v49 = vpop.f32.mrb[15].mxu1 }
 0x6ac   : > { %1418 = vrot.lane.b32.xlu1 %v2257_v50, %s2541_s17 }
 0x6ad   : > { %v1278_v51 = vpop.f32.mrb[16].mxu1 }
 0x6ae   : > { %v2041_v52 = vpop.f32.mrb[17].mxu1  ;;  %v1284_v0 = vsel %vm825_vm3, %v1278_v51, -inf }
 0x6af   : > { %v1281_v53 = vpop.f32.mrb[18].mxu1 }
 0x6b0   : > { %1413 = vrot.lane.b32.xlu1 %v2858_v62, %s2541_s17  ;;  %v2042_v54 = vpop.f32.mrb[19].mxu1 }
 0x6b4   : > { %1466 = vrot.lane.b32.xlu1 %v2858_v62, %s2542_s19  ;;  %v2258_v62 = vld [vmem:[#allocation4] ss:$0 sps:$4 sm:$0xff]  }
 0x728   : > { %v999_v55 = vpop.xlane.xlu1 %998 }
 0x729   : > { %v1000_v56 = vsub.f32 %v991_v45, %v999_v55  ;;  %v2264_v45 = vld [vmem:[#allocation4] ss:$0 sps:$4 sm:$0xff]  }
 0x72b   : > { %v1001_v57 = vmul.f32 1.442695, %v1000_v56  ;;  %v2267_v56 = vld [vmem:[#allocation11 + $0x30] sm:$0xff]  }
 0x72c   : > { %v1419_v58 = vpop.permute.xlu1 %1418 }
 0x72d   : > { %2275 = vpow2.f32 %v1001_v57  ;;  %v1424_v59 = vsel %vm732_vm1, %v1419_v58, 0  ;;  %v2268_v58 = vld [vmem:[#allocation11 + $0x38] sm:$0xff]  }
 0x72e   : > { %2058 = vmatpush3.bf16.xpose.msra.mxu1 %v1424_v59 }
 0x72f   : > { %2063 = vmatprep.subr.bf16.mxu1 %v2533_v4 }
 0x730   : > { %v1414_v60 = vpop.permute.xlu1 %1413 }
 0x734   : > { %v1467_v11 = vpop.permute.xlu1 %1466 }
 0x735   : > { %2060 = vmatmul.mubr.msk.bf16.vlgmr.msra.gmra.mrb[20].mxu1 %vm732_vm1, %v1414_v60 }
 0x736   : > { %2065 = vmatprep.mubr.msk.bf16.mxu1 %vm2535_vm0, %v2533_v4 }
 0x737   : > { %v2276_v61 = vpop.eup %2275 }
 0x738   : > { %v1003_v63 = vsel %vm825_vm3, %v2276_v61, 0.0 }
 0x739   : > { %1004 = vadd.xlane.f32.xlu0 %v1003_v63 }
 0x74f   : > { %1016 = vrot.lane.b32.xlu0 %v2258_v62, %s2540_s18 }
 0x753   : > { %1468 = vrot.lane.b32.xlu0 %v2257_v50, %s2542_s19 }
 0x772   : > { %1285 = vmax.xlane.f32.xlu0 %v1284_v0 }
 0x788   : > { %1303 = vrot.lane.b32.xlu0 %v2259_v1, %s2536_s28  ;;  %s1679_s28 = sshll.u32 %s2887_s15, 4  ;;  %s2981_s28 = int_to_ptr.vmem [resolvable:$true] %s1679_s28 }
 0x789   : > { %s2401_s27 = scalar_lea.vmem %s2981_s28, 512 }
 0x78a   : > { %p2402_p13 = scmp.ne.s32.totalorder %s2981_s28, %s2401_s27 }
 0x78c   : > { %p2403_p6 = pnand %p2402_p13, %p2757_p3 }
 0x78e   : > { %p2404_p10 = pneg %p2403_p6 }
 0x7c6   : > { %v1005_v2 = vpop.xlane.xlu0 %1004 }
 0x7c7   : > { %2277 = vrcp.f32 %v1005_v2 }
 0x7ca   : > { %v1017_v3 = vpop.permute.xlu0 %1016 }
 0x7cb   : > { %v1022_v5 = vsel %vm844_vm2, %v1017_v3, 0 }
 0x7cc   : > { %2010 = vmatpush3.bf16.msra.mxu0 %v1022_v5 }
 0x7cd   : > { %2015 = vmatprep.subr.bf16.mxu0 %v2533_v4 }
 0x7ce   : > { %v1469_v6 = vpop.permute.xlu0 %1468 }
 0x7cf   : > { %v1474_v7 = vsel %vm732_vm1, %v1469_v6, 0 }
 0x7d0   : > { %2064 = vmatpush3.bf16.xpose.msra.mxu1 %v1474_v7 }
 0x7d1   : > { %v2278_v8 = vpop.eup %2277 }
 0x7d2   : > { %v1008_v9 = vmul.f32 %v2278_v8, %v2276_v61 }
 0x7d4   : > { %1879 = vst.msk [vmem:[%s2887_s15 + $0x8] sm:$0xff] %vm825_vm3, %v1008_v9  ;;  %v1011_v10 = vpack.c.bf16 %v1008_v9, %v1008_v9 }
 0x7d6   : > { %2012 = vmatmul.mubr.msk.bf16.vlgmr.msra.gmra.mrb[8].mxu0 %vm825_vm3, %v1011_v10 }
 0x7d7   : > { %2066 = vmatmul.mubr.msk.bf16.vlgmr.msra.gmra.mrb[20].mxu1 %vm732_vm1, %v1467_v11  ;;  %2019 = vmatprep.mubr.msk.bf16.mxu0 %vm2535_vm0, %v2533_v4 }
 0x7d8   : > { %2016 = vmatpush3.bf16.msra.mxu0 %v2260_v17 }
 0x7d9   : > { %2017 = vmatprep.subr.bf16.mxu0 %v2533_v4 }
 0x7dc   : > { %2018 = vmatpush3.bf16.msra.mxu0 %v2261_v18 }
 0x7dd   : > { %2023 = vmatprep.subr.bf16.mxu0 %v2533_v4 }
 0x7ff   : > { %v1286_v12 = vpop.xlane.xlu0 %1285 }
 0x800   : > { %v1287_v13 = vsub.f32 %v1278_v51, %v1286_v12 }
 0x802   : > { %v1288_v14 = vmul.f32 1.442695, %v1287_v13 }
 0x803   : > { %v1304_v34 = vpop.permute.xlu0 %1303 }
 0x804   : > { %2279 = vpow2.f32 %v1288_v14  ;;  %v1309_v36 = vsel %vm844_vm2, %v1304_v34, 0 }
 0x80e   : > { %v2280_v15 = vpop.eup %2279 }
 0x80f   : > { %v1290_v16 = vsel %vm825_vm3, %v2280_v15, 0.0 }
 0x810   : > { %1291 = vadd.xlane.f32.xlu1 %v1290_v16 }
 0x89d   : > { %v1292_v19 = vpop.xlane.xlu1 %1291 }
 0x89e   : > { %2281 = vrcp.f32 %v1292_v19 }
 0x8a8   : > { %v2282_v20 = vpop.eup %2281 }
 0x8a9   : > { %v1295_v21 = vmul.f32 %v2282_v20, %v2280_v15  ;;  %v1058_v22 = vpop.f32.mrb[8].mxu0 }
 0x8aa   : > { %v1064_v24 = vpack.c.bf16 %v1058_v22, %v1058_v22  ;;  %v2013_v25 = vpop.f32.mrb[9].mxu0  ;;  %v1510_v26 = vpop.f32.mrb[20].mxu1 }
 0x8ab   : > { %1891 = vst.msk [vmem:[%s2887_s15 + $0x10] sm:$0xff] %vm825_vm3, %v1295_v21  ;;  %v1061_v27 = vpop.f32.mrb[10].mxu0  ;;  %v2067_v28 = vpop.f32.mrb[21].mxu1  ;;  %v1516_v29 = vsel %vm825_vm3, %v1510_v26, -inf  ;;  %v1298_v37 = vpack.c.bf16 %v1295_v21, %v1295_v21 }
 0x8ac   : > { %v2014_v30 = vpop.f32.mrb[11].mxu0  ;;  %2020 = vmatmul.mubr.msk.bf16.vlgmr.msra.gmra.mrb[12].mxu0 %vm1081_vm4, %v1064_v24  ;;  %1517 = vmax.xlane.f32.xlu1 %v1516_v29  ;;  %v1513_v31 = vpop.f32.mrb[22].mxu1 }
 0x8ad   : > { %v2068_v32 = vpop.f32.mrb[23].mxu1  ;;  %2024 = vmatpush3.bf16.msra.mxu0 %v2262_v23  ;;  %2027 = vmatprep.mubr.msk.bf16.mxu0 %vm2535_vm0, %v2533_v4 }
 0x8ae   : > { %2025 = vmatprep.subr.bf16.mxu0 %v2533_v4 }
 0x8b1   : > { %2026 = vmatpush3.bf16.msra.mxu0 %v2263_v33 }
 0x8b2   : > { %2043 = vmatprep.subr.bf16.mxu0 %v2533_v4 }
 0x8b8   : > { %2028 = vmatmul.mubr.msk.bf16.vlgmr.msra.gmra.mrb[12].mxu0 %vm1081_vm4, %v888_v35 }
 0x8b9   : > { %2044 = vmatpush3.bf16.msra.mxu0 %v1309_v36  ;;  %2045 = vmatprep.mubr.msk.bf16.mxu0 %vm2535_vm0, %v2533_v4 }
 0x8ba   : > { %2049 = vmatprep.subr.bf16.mxu0 %v2533_v4 }
 0x8c0   : > { %2046 = vmatmul.mubr.msk.bf16.vlgmr.msra.gmra.mrb[16].mxu0 %vm825_vm3, %v1298_v37 }
 0x8c1   : > { %2053 = vmatprep.mubr.msk.bf16.mxu0 %vm2535_vm0, %v2533_v4  ;;  %2050 = vmatpush3.bf16.msra.mxu0 %v2265_v38 }
 0x8c2   : > { %2051 = vmatprep.subr.bf16.mxu0 %v2533_v4 }
 0x8c5   : > { %2052 = vmatpush3.bf16.msra.mxu0 %v2266_v39 }
 0x8c6   : > { %2069 = vmatprep.subr.bf16.mxu0 %v2533_v4 }
 0x939   : > { %v1518_v40 = vpop.xlane.xlu1 %1517 }
 0x93a   : > { %v1519_v41 = vsub.f32 %v1510_v26, %v1518_v40 }
 0x93c   : > { %v1520_v42 = vmul.f32 1.442695, %v1519_v41 }
 0x93e   : > { %2283 = vpow2.f32 %v1520_v42 }
 0x948   : > { %v2284_v43 = vpop.eup %2283 }
 0x949   : > { %v1522_v44 = vsel %vm825_vm3, %v2284_v43, 0.0 }
 0x94a   : > { %1523 = vadd.xlane.f32.xlu1 %v1522_v44 }
 0x95b   : > { %1535 = vrot.lane.b32.xlu1 %v2264_v45, %s2539_s23  ;;  %s2543_s23 = smov [#allocation14]  }
 0x95c   : > { %s2405_s18 = sshll.u32 %s2543_s23, 4  ;;  %s2406_s18 = int_to_ptr.vmem [resolvable:$false] %s2405_s18 }
 0x95d   : > { %s2407_s12 = scalar_lea.vmem %s2406_s18, 1024  ;;  %p2408_p11 = scmp.lt.s32.totalorder %s2981_s28, %s2406_s18 }
 0x95e   : > { %p2409_p5 = scmp.lt.s32.totalorder %s2407_s12, %s2401_s27 }
 0x960   : > { %p2410_p9 = por %p2409_p5, %p2408_p11 }
 0x962   : > { %p2411_p0 = pnand %p2410_p9, %p2404_p10 }
 0x993   : > { %v1345_v46 = vpop.f32.mrb[16].mxu0 }
 0x994   : > { %v1351_v47 = vpack.c.bf16 %v1345_v46, %v1345_v46  ;;  %v2047_v48 = vpop.f32.mrb[17].mxu0 }
 0x995   : > { %v1348_v49 = vpop.f32.mrb[18].mxu0 }
 0x996   : > { %v2048_v50 = vpop.f32.mrb[19].mxu0  ;;  %2054 = vmatmul.mubr.msk.bf16.vlgmr.msra.gmra.mrb[12].mxu0 %vm1081_vm4, %v1351_v47 }
 0x997   : > { %2071 = vmatprep.mubr.msk.bf16.mxu0 %vm2535_vm0, %v2533_v4 }
 0x9d7   : > { %v1524_v51 = vpop.xlane.xlu1 %1523 }
 0x9d8   : > { %2285 = vrcp.f32 %v1524_v51 }
 0x9db   : > { %v1536_v52 = vpop.permute.xlu1 %1535 }
 0x9dc   : > { %v1541_v53 = vsel %vm844_vm2, %v1536_v52, 0 }
 0x9dd   : > { %2070 = vmatpush3.bf16.msra.mxu0 %v1541_v53 }
 0x9de   : > { %2075 = vmatprep.subr.bf16.mxu0 %v2533_v4 }
 0x9e2   : > { %v2286_v54 = vpop.eup %2285 }
 0x9e3   : > { %v1527_v55 = vmul.f32 %v2286_v54, %v2284_v43 }
 0x9e5   : > { %1900 = vst.msk [vmem:[%s2887_s15 + $0x18] sm:$0xff] %vm825_vm3, %v1527_v55  ;;  %v1530_v57 = vpack.c.bf16 %v1527_v55, %v1527_v55 }
 0x9e7   : > { %2072 = vmatmul.mubr.msk.bf16.vlgmr.msra.gmra.mrb[20].mxu0 %vm825_vm3, %v1530_v57 }
 0x9e8   : > { %2076 = vmatpush3.bf16.msra.mxu0 %v2267_v56  ;;  %2079 = vmatprep.mubr.msk.bf16.mxu0 %vm2535_vm0, %v2533_v4 }
 0x9e9   : > { %2077 = vmatprep.subr.bf16.mxu0 %v2533_v4 }
 0x9ec   : > { %2078 = vmatpush3.bf16.msra.mxu0 %v2268_v58 }
 0xaba   : > { %v1577_v59 = vpop.f32.mrb[20].mxu0 }
 0xabb   : > { %v1583_v60 = vpack.c.bf16 %v1577_v59, %v1577_v59  ;;  %v2073_v61 = vpop.f32.mrb[21].mxu0 }
 0xabc   : > { %v1580_v63 = vpop.f32.mrb[22].mxu0 }
 0xabd   : > { %v2074_v62 = vpop.f32.mrb[23].mxu0  ;;  %2080 = vmatmul.mubr.msk.bf16.vlgmr.msra.gmra.mrb[12].mxu0 %vm1081_vm4, %v1583_v60 }
 0xabe   : > { %2414 = shalt.err (!%p2411_p0)
}
 0xabf   : > { %s2415_s15 = scalar_lea.hbm %s2979_s25, 512  ;;  %s2419_s26 = scalar_lea.hbm %s3107_s9, 1024 }
 0xac0   : > { %p2416_p4 = scmp.ne.s32.totalorder %s2979_s25, %s2415_s15  ;;  %p2420_p1 = scmp.lt.u32.totalorder %s2979_s25, %s3107_s9 }
 0xac1   : > { %p2421_p12 = scmp.lt.u32.totalorder %s2419_s26, %s2415_s15  ;;  %p2423_p13 = scmp.lt.u32.totalorder %s2415_s15, %s2979_s25 }
 0xac2   : > { %p2417_p2 = pnand %p2416_p4, %p2757_p3 }
 0xac3   : > { %p2422_p7 = por %p2421_p12, %p2420_p1 }
 0xac4   : > { %p2418_p8 = pneg %p2417_p2 }
 0xac5   : > { %p2424_p6 = por %p2423_p13, %p2422_p7 }
 0xac7   : > { %p2425_p10 = pnand %p2424_p6, %p2418_p8 }
 0xac9   : > { %2428 = shalt.err (!%p2425_p10)
}
 0xaca   : > { %s2544_s27 = smov 128   ;;  %s2545_s23 = smov 8  }
 0xacb   : > { %2123 = dma.vmem_to_hbm [thread:$0]  (%p2757_p3), %s2981_s28, 512, %s2979_s25, %s1651_s29, %s2544_s27, %s2544_s27, %s2545_s23  }
 0xacc   : > { %s411_s18 = scalar_lea.vmem [#allocation13], %s1840_s24  ;;  %s1908_s15 = sshll.u32 %s3106_s21, 7 }
 0xacd   : > { %s1665_s12 = sshll.u32 %s411_s18, 4  ;;  %s3108_s26 = sld [smem:[#allocation25_spill]]  ;;  %s3010_s12 = int_to_ptr.vmem [resolvable:$true] %s1665_s12 }
 0xace   : > { %s1646_s1 = scalar_lea.sflag [#allocation7], %s2810_s20  ;;  %s2429_s28 = scalar_lea.vmem %s3010_s12, 128 }
 0xacf   : > { %p2430_p11 = scmp.ne.s32.totalorder %s3010_s12, %s2429_s28  ;;  %s2546_s24 = smov [#allocation13]  }
 0xad0   : > { %s2433_s21 = sshll.u32 %s2546_s24, 4  ;;  %s2434_s21 = int_to_ptr.vmem [resolvable:$false] %s2433_s21 }
 0xad1   : > { %p2431_p5 = pnand %p2430_p11, %p2757_p3  ;;  %s2435_s25 = scalar_lea.vmem %s2434_s21, 256 }
 0xad2   : > { %p2436_p0 = scmp.lt.s32.totalorder %s3010_s12, %s2434_s21  ;;  %p2437_p4 = scmp.lt.s32.totalorder %s2435_s25, %s2429_s28 }
 0xad3   : > { %s3015_s8 = scalar_lea.hbm %s3108_s26, %s1908_s15  ;;  %p2432_p9 = pneg %p2431_p5 }
 0xad4   : > { %p2438_p2 = por %p2437_p4, %p2436_p0 }
 0xad6   : > { %p2439_p8 = pnand %p2438_p2, %p2432_p9 }
 0xb90   : > { %v1637_v4 = vpop.f32.mrb[12].mxu0 }
 0xb91   : > { %1644 = vst [vmem:[%s411_s18] sm:$0xff] %v1637_v4  ;;  %v2081_v0 = vpop.f32.mrb[13].mxu0 }
 0xb92   : > { %v1640_v1 = vpop.f32.mrb[14].mxu0 }
 0xb93   : > { %2442 = shalt.err (!%p2439_p8)
}
 0xb94   : > { %s2443_s20 = scalar_lea.hbm %s3015_s8, 128  ;;  %s2447_s23 = scalar_lea.hbm %s3108_s26, 256 }
 0xb95   : > { %p2444_p1 = scmp.ne.s32.totalorder %s3015_s8, %s2443_s20  ;;  %p2448_p13 = scmp.lt.u32.totalorder %s3015_s8, %s3108_s26 }
 0xb96   : > { %p2449_p6 = scmp.lt.u32.totalorder %s2447_s23, %s2443_s20  ;;  %p2451_p11 = scmp.lt.u32.totalorder %s2443_s20, %s3015_s8 }
 0xb97   : > { %p2445_p12 = pnand %p2444_p1, %p2757_p3 }
 0xb98   : > { %p2450_p10 = por %p2449_p6, %p2448_p13 }
 0xb99   : > { %p2446_p7 = pneg %p2445_p12 }
 0xb9a   : > { %p2452_p5 = por %p2451_p11, %p2450_p10 }
 0xb9c   : > { %p2453_p9 = pnand %p2452_p5, %p2446_p7 }
 0xb9e   : > { %2456 = shalt.err (!%p2453_p9)
}
 0xb9f   : > { %2122 = dma.vmem_to_hbm [thread:$0]  (%p2757_p3), %s3010_s12, 128, %s3015_s8, %s1646_s1   ;;  %v2082_v2 = vpop.f32.mrb[15].mxu0 }
 0xba0 PF: > { %s3109_s17 = sld [smem:[#allocation21_spill]]  ;;  %s3110_s19 = sld [smem:[#allocation23_spill]] }
 0xba1   : > { %p3112_p4 = scmp.ge.s32.totalorder %s2523_s14, 2 }
 0xba6   : > { %s1694_s28 = sand.u32 1, %s3109_s17   ;;  %p3111_p0 = scmp.ne.s32.totalorder %s3110_s19, 0 }
 0xba7   : > { %s1695_s24 = scalar_lea.sflag [#allocation7], %s1694_s28 }
 0xba8   : > { %p2141_p2 = pnand %p3112_p4, %p3111_p0 }
 0xbaa   : > { %2494 = dma.done.wait (!%p2141_p2), %s1695_s24, 128  }
 0xbab   : > { %2496 = vsyncadd (!%p2141_p2), %s1695_s24, 4294967168  ;;  %s1704_s21 = scalar_lea.sflag [#allocation15], %s1694_s28 }
 0xbac   : > { %2498 = dma.done.wait (!%p2141_p2), %s1704_s21, 512  }
 0xbad   : > { %2500 = vsyncadd (!%p2141_p2), %s1704_s21, 4294966784  ;;  %s31_s14 = sadd.s32 1, %s2523_s14   ;;  %s3113_s30 = smov %s2507_s10 }
 0xbae   : > { %p28_p8 = scmp.ge.s32.totalorder %s31_s14, 4   ;;  %s3114_s10 = smov %s2511_s11 }
 0xbaf   : > { %s3115_s11 = smov %s2766_s16  ;;  %s3116_s12 = smov %s2519_s13 }
 0xbb0   : > { %s3117_s13 = smov %s3119_s22  ;;  %30 = sbr.rel (!%p28_p8) target bundleno = 14 (0xe), region = 136 }
 0xbb7   :  { %1709 = vsyncpa [#allocation6], 1 }
 0xbb8   :  { %1711 = vsyncpa [#allocation6 + $0x1], 1 }
 0xbb9   :  { %1712 = vsyncpa [#allocation9], 1 }
 0xbba   :  { %1713 = vsyncpa [#allocation12], 1 }
 0xbbb   :  { %1714 = vsyncpa [#allocation7], 1 }
 0xbbc   :  { %1716 = vsyncpa [#allocation7 + $0x1], 1 }
 0xbbd   :  { %1717 = vsyncpa [#allocation15], 1 }
 0xbbe   :  { %1719 = vsyncpa [#allocation15 + $0x1], 1 }

</bundles_post_ra>
